<compile_context>
chip_gen: v7x
topology: tpu7x:2x2x1
jax: 0.10.0
libtpu: 0.0.40
codegen_flags: <defaults>
</compile_context>

<pallas_src>
import jax
import jax.numpy as jnp
from jax import lax
from jax.experimental import pallas as pl
from jax.experimental.pallas import tpu as pltpu

EPS = 1e-5


def _residual_block_kernel(x_ref, w1_ref, w2_ref, pv_ref, out_ref, pad_ref):
    # x_ref:   (N, H, W*C)    f32 input rows, channels-fastest on lanes
    # w*_ref:  (3, W*C, W*C)  bf16 per-H-tap banded conv GEMM blocks
    # pv_ref:  (4, C)         f32 rows: g1, be1, g2, be2
    # pad_ref: (N, H+2, W*C)  bf16 VMEM scratch, shared by both convs
    N, H, WC = x_ref.shape
    C = pv_ref.shape[1]
    NH = N * H
    inv_nhw = 1.0 / float(NH * (WC // C))

    # lane -> channel reduction / channel -> lane broadcast selectors, built
    # in-kernel from iota (saves two HBM inputs + DMAs).
    sel = (lax.broadcasted_iota(jnp.int32, (WC, C), 0) % C
           == lax.broadcasted_iota(jnp.int32, (WC, C), 1)).astype(jnp.float32)
    selt = (lax.broadcasted_iota(jnp.int32, (C, WC), 1) % C
            == lax.broadcasted_iota(jnp.int32, (C, WC), 0)).astype(jnp.float32)

    # Zero only the 1-row top/bottom halo of the shared padded scratch (once).
    zrow = jnp.zeros((N, 1, WC), pad_ref.dtype)
    pad_ref[:, 0:1, :] = zrow
    pad_ref[:, H + 1:H + 2, :] = zrow

    # conv1 input: x cast to the bf16 GEMM operand dtype.
    pad_ref[:, 1:H + 1, :] = x_ref[...].astype(pad_ref.dtype)

    def conv_bn(w_ref, gamma, beta):
        # 3x3 conv as three accumulated dots (one per H-shifted row slab); the
        # W taps + width padding live inside each banded (WC, WC) block, so no
        # im2col patch is materialized.  f32 accumulation out of the MXU.
        a = jnp.dot(pad_ref[:, 0:H, :].reshape(NH, WC), w_ref[0],
                    preferred_element_type=jnp.float32)
        a = a + jnp.dot(pad_ref[:, 1:H + 1, :].reshape(NH, WC), w_ref[1],
                        preferred_element_type=jnp.float32)
        a = a + jnp.dot(pad_ref[:, 2:H + 2, :].reshape(NH, WC), w_ref[2],
                        preferred_element_type=jnp.float32)

        # Training-mode BatchNorm2d: biased one-pass stats over (N, H, W),
        # computed on the f32 accumulator (per review correctness note).
        colsum = jnp.sum(a, axis=0, keepdims=True)        # (1, WC)
        colsq = jnp.sum(a * a, axis=0, keepdims=True)     # (1, WC)
        mean = jnp.dot(colsum, sel) * inv_nhw             # (1, C)
        var = jnp.dot(colsq, sel) * inv_nhw - mean * mean
        s = gamma * lax.rsqrt(var + EPS)                  # (1, C)
        t = beta - mean * s
        # lane-dense per-channel scale/shift via MXU broadcast.
        return a * jnp.dot(s, selt) + jnp.dot(t, selt)    # (NH, WC) f32

    g1, be1 = pv_ref[0:1, :], pv_ref[1:2, :]
    g2, be2 = pv_ref[2:3, :], pv_ref[3:4, :]

    # Conv1 + BN1 + ReLU, written straight back into the padded scratch
    # (no extra VMEM round trip through a temporary buffer).
    h = jnp.maximum(conv_bn(w1_ref, g1, be1), 0.0)
    pad_ref[:, 1:H + 1, :] = h.reshape(N, H, WC).astype(pad_ref.dtype)

    # Conv2 + BN2, then residual add; x is re-read from its resident VMEM
    # block instead of being held live across both convs.
    y = conv_bn(w2_ref, g2, be2)
    out_ref[...] = (x_ref[...] + y.reshape(N, H, WC)).astype(out_ref.dtype)


def _full_spec(shape):
    nd = len(shape)
    return pl.BlockSpec(shape, lambda i, _nd=nd: (0,) * _nd)


def _conv_tap_blocks(w_oihw, width):
    """PyTorch (Cout, Cin, 3, 3) conv weight -> (3, W*Cin, W*Cout) GEMM blocks.

    Block kh maps the kh-shifted, channels-fastest row slab of the W-unpadded
    input to the output row.  Entry [w_in*Cin + ci, w_out*Cout + co] =
    w[co, ci, kh, kw] with kw = w_in - w_out + 1 when 0 <= kw < 3, else 0:
    this folds the W-direction taps AND the width zero-padding into the GEMM.
    """
    cout, cin, kh_sz, kw_sz = w_oihw.shape
    wt = jnp.transpose(w_oihw, (2, 3, 1, 0)).astype(jnp.float32)  # (kh,kw,ci,co)
    r = jnp.arange(width)
    blocks = []
    for kh in range(kh_sz):
        blk = jnp.zeros((width, cin, width, cout), jnp.float32)
        for kw in range(kw_sz):
            band = (r[:, None] - r[None, :] == (kw - 1)).astype(jnp.float32)
            blk = blk + band[:, None, :, None] * wt[kh, kw][None, :, None, :]
        blocks.append(blk.reshape(width * cin, width * cout))
    return jnp.stack(blocks, axis=0)


def residual_block(x_nchw, params):
    """ResidualBlock forward. x_nchw: (N, C, H, W) float32 (PyTorch layout)."""
    # Conv biases are mathematically cancelled by training-mode BN, so the
    # kernel never sees them.
    w1, _b1, g1, be1, w2, _b2, g2, be2 = params
    N, C, H, W = x_nchw.shape
    WC = W * C

    # NCHW -> (N, H, W*C): channels-fastest rows, lane-dense inside the kernel.
    x_flat = jnp.transpose(x_nchw, (0, 2, 3, 1)).reshape(N, H, WC)

    wm1 = _conv_tap_blocks(w1, W).astype(jnp.bfloat16)   # (3, WC, WC)
    wm2 = _conv_tap_blocks(w2, W).astype(jnp.bfloat16)
    pv = jnp.stack([g1, be1, g2, be2], axis=0).astype(jnp.float32)  # (4, C)

    args = (x_flat, wm1, wm2, pv)
    out_flat = pl.pallas_call(
        _residual_block_kernel,
        out_shape=jax.ShapeDtypeStruct((N, H, WC), x_nchw.dtype),
        grid=(1,),
        in_specs=[_full_spec(a.shape) for a in args],
        out_specs=_full_spec((N, H, WC)),
        scratch_shapes=[pltpu.VMEM((N, H + 2, WC), jnp.bfloat16)],
        compiler_params=pltpu.CompilerParams(
            dimension_semantics=("arbitrary",)),
    )(*args)

    # TODO(synk): at realistic DualGAN sizes (C=64..256, H=W~128) switch to a
    # C-on-lanes layout with dense (C, C) per-tap weights (the banded blocks
    # grow O(W^2*C^2) and inflate MXU FLOPs by W/3), band the grid over N/H
    # row bands marked "parallel" with a 2-pass BN reduction, keep the weights
    # VMEM-resident via constant index_maps, and size GEMM M tiles to 256
    # (v6e/v7x) / 128 (v5e).  At this test shape (W*C = 128 lanes exactly,
    # NH = 32 rows, C = 8) a single resident lane-dense block is launch/DMA
    # bound and the banded form is the lane-efficient one.
    return jnp.transpose(out_flat.reshape(N, H, W, C), (0, 3, 1, 2))


def residual_block_reference(x, params):
    """Pure-JAX reference (NCHW, same semantics as the PyTorch module)."""
    w1, b1, g1, be1, w2, b2, g2, be2 = params

    def conv(v, w, b):
        y = lax.conv_general_dilated(
            v, w, window_strides=(1, 1), padding=((1, 1), (1, 1)),
            dimension_numbers=("NCHW", "OIHW", "NCHW"),
            precision=lax.Precision.HIGHEST)
        return y + b.reshape(1, -1, 1, 1)

    def bn(v, g, be):
        mean = jnp.mean(v, axis=(0, 2, 3), keepdims=True)
        var = jnp.mean((v - mean) ** 2, axis=(0, 2, 3), keepdims=True)
        return ((v - mean) * lax.rsqrt(var + EPS) * g.reshape(1, -1, 1, 1)
                + be.reshape(1, -1, 1, 1))

    h = jnp.maximum(bn(conv(x, w1, b1), g1, be1), 0.0)
    y = bn(conv(h, w2, b2), g2, be2)
    return x + y


if __name__ == "__main__":
    key = jax.random.PRNGKey(0)
    # Small shapes consistent with the module (in_features scaled 64 -> 8);
    # W*C = 128 so the in-kernel layout is exactly lane-dense.
    N, C, H, W = 2, 8, 16, 16
    ks = jax.random.split(key, 9)

    x = jax.random.normal(ks[0], (N, C, H, W), jnp.float32)
    w1 = 0.1 * jax.random.normal(ks[1], (C, C, 3, 3), jnp.float32)
    b1 = 0.05 * jax.random.normal(ks[2], (C,), jnp.float32)
    g1 = 1.0 + 0.1 * jax.random.normal(ks[3], (C,), jnp.float32)
    be1 = 0.1 * jax.random.normal(ks[4], (C,), jnp.float32)
    w2 = 0.1 * jax.random.normal(ks[5], (C, C, 3, 3), jnp.float32)
    b2 = 0.05 * jax.random.normal(ks[6], (C,), jnp.float32)
    g2 = 1.0 + 0.1 * jax.random.normal(ks[7], (C,), jnp.float32)
    be2 = 0.1 * jax.random.normal(ks[8], (C,), jnp.float32)
    params = (w1, b1, g1, be1, w2, b2, g2, be2)

    out = residual_block(x, params)
    out = jax.block_until_ready(out)

    ref = residual_block_reference(x, params)
    # bf16 MXU operands vs an f32 HIGHEST-precision reference: 2e-2 is the
    # standard tolerance for that comparison (observed error is ~1e-2 max).
    if not bool(jnp.allclose(out, ref, atol=2e-2, rtol=2e-2)):
        raise AssertionError("Pallas output does not match reference")
    print("KERNEL_OK")
</pallas_src>

<mosaic_0001>
module attributes {stable_mosaic.version = 11 : i64} {
  func.func @_residual_block_kernel(%arg0: i32, %arg1: memref<2x16x128xf32, #tpu.memory_space<vmem>>, %arg2: memref<3x128x128xbf16, #tpu.memory_space<vmem>>, %arg3: memref<3x128x128xbf16, #tpu.memory_space<vmem>>, %arg4: memref<4x8xf32, #tpu.memory_space<vmem>>, %arg5: memref<2x16x128xf32, #tpu.memory_space<vmem>>, %arg6: memref<2x18x128xbf16, #tpu.memory_space<vmem>>) attributes {dimension_semantics = [#tpu.dimension_semantics<arbitrary>], iteration_bounds = array<i64: 1>, scalar_prefetch = 0 : i64, scratch_operands = 1 : i64, tpu.core_type = #tpu.core_type<tc>, window_params = [{pipeline_mode = #tpu.pipeline_mode<synchronous>, transform_indices = @transform_0, window_bounds = array<i64: 2, 16, 128>}, {pipeline_mode = #tpu.pipeline_mode<synchronous>, transform_indices = @transform_1, window_bounds = array<i64: 3, 128, 128>}, {pipeline_mode = #tpu.pipeline_mode<synchronous>, transform_indices = @transform_2, window_bounds = array<i64: 3, 128, 128>}, {pipeline_mode = #tpu.pipeline_mode<synchronous>, transform_indices = @transform_3, window_bounds = array<i64: 4, 8>}, {pipeline_mode = #tpu.pipeline_mode<synchronous>, transform_indices = @transform_4, window_bounds = array<i64: 2, 16, 128>}]} {
    %0 = tpu.iota {dimensions = array<i32: 0>} : vector<128x8xi32>
    %c8_i32 = arith.constant 8 : i32
    %c0_i32 = arith.constant 0 : i32
    %1 = arith.cmpi eq, %c8_i32, %c0_i32 : i32
    %c1_i32 = arith.constant 1 : i32
    %2 = arith.select %1, %c1_i32, %c8_i32 : i32
    %3 = vector.broadcast %2 : i32 to vector<128x8xi32>
    %4 = arith.remsi %0, %3 : vector<128x8xi32>
    %c0_i32_0 = arith.constant 0 : i32
    %5 = vector.broadcast %c0_i32_0 : i32 to vector<128x8xi32>
    %6 = arith.cmpi ne, %4, %5 : vector<128x8xi32>
    %c0_i32_1 = arith.constant 0 : i32
    %7 = vector.broadcast %c0_i32_1 : i32 to vector<128x8xi32>
    %8 = arith.cmpi slt, %4, %7 : vector<128x8xi32>
    %c0_i32_2 = arith.constant 0 : i32
    %9 = arith.cmpi slt, %2, %c0_i32_2 : i32
    %10 = vector.broadcast %9 : i1 to vector<128x8xi1>
    %11 = vector.broadcast %10 : vector<128x8xi1> to vector<128x8xi1>
    %12 = arith.xori %8, %11 : vector<128x8xi1>
    %13 = arith.andi %12, %6 : vector<128x8xi1>
    %14 = vector.broadcast %2 : i32 to vector<128x8xi32>
    %15 = arith.addi %4, %14 : vector<128x8xi32>
    %16 = arith.select %13, %15, %4 : vector<128x8xi1>, vector<128x8xi32>
    %17 = tpu.iota {dimensions = array<i32: 1>} : vector<128x8xi32>
    %18 = arith.cmpi eq, %16, %17 : vector<128x8xi32>
    %19 = arith.extui %18 : vector<128x8xi1> to vector<128x8xi32>
    %20 = arith.sitofp %19 : vector<128x8xi32> to vector<128x8xf32>
    %21 = tpu.iota {dimensions = array<i32: 1>} : vector<8x128xi32>
    %c8_i32_3 = arith.constant 8 : i32
    %c0_i32_4 = arith.constant 0 : i32
    %22 = arith.cmpi eq, %c8_i32_3, %c0_i32_4 : i32
    %c1_i32_5 = arith.constant 1 : i32
    %23 = arith.select %22, %c1_i32_5, %c8_i32_3 : i32
    %24 = vector.broadcast %23 : i32 to vector<8x128xi32>
    %25 = arith.remsi %21, %24 : vector<8x128xi32>
    %c0_i32_6 = arith.constant 0 : i32
    %26 = vector.broadcast %c0_i32_6 : i32 to vector<8x128xi32>
    %27 = arith.cmpi ne, %25, %26 : vector<8x128xi32>
    %c0_i32_7 = arith.constant 0 : i32
    %28 = vector.broadcast %c0_i32_7 : i32 to vector<8x128xi32>
    %29 = arith.cmpi slt, %25, %28 : vector<8x128xi32>
    %c0_i32_8 = arith.constant 0 : i32
    %30 = arith.cmpi slt, %23, %c0_i32_8 : i32
    %31 = vector.broadcast %30 : i1 to vector<8x128xi1>
    %32 = vector.broadcast %31 : vector<8x128xi1> to vector<8x128xi1>
    %33 = arith.xori %29, %32 : vector<8x128xi1>
    %34 = arith.andi %33, %27 : vector<8x128xi1>
    %35 = vector.broadcast %23 : i32 to vector<8x128xi32>
    %36 = arith.addi %25, %35 : vector<8x128xi32>
    %37 = arith.select %34, %36, %25 : vector<8x128xi1>, vector<8x128xi32>
    %38 = tpu.iota {dimensions = array<i32: 0>} : vector<8x128xi32>
    %39 = arith.cmpi eq, %37, %38 : vector<8x128xi32>
    %40 = arith.extui %39 : vector<8x128xi1> to vector<8x128xi32>
    %41 = arith.sitofp %40 : vector<8x128xi32> to vector<8x128xf32>
    %cst = arith.constant 0.000000e+00 : bf16
    %42 = vector.broadcast %cst : bf16 to vector<2x1x128xbf16>
    %c0 = arith.constant 0 : index
    %c0_9 = arith.constant 0 : index
    %c0_10 = arith.constant 0 : index
    %43 = vector.load %arg6[%c0, %c0_9, %c0_10] : memref<2x18x128xbf16, #tpu.memory_space<vmem>>, vector<2x1x128xbf16>
    tpu.vector_store %arg6[%c0, %c0_9, %c0_10], %42 {strides = array<i32>} : memref<2x18x128xbf16, #tpu.memory_space<vmem>>, vector<2x1x128xbf16>,
    %c0_11 = arith.constant 0 : index
    %c17 = arith.constant 17 : index
    %c0_12 = arith.constant 0 : index
    %44 = vector.load %arg6[%c0_11, %c17, %c0_12] : memref<2x18x128xbf16, #tpu.memory_space<vmem>>, vector<2x1x128xbf16>
    tpu.vector_store %arg6[%c0_11, %c17, %c0_12], %42 {strides = array<i32>} : memref<2x18x128xbf16, #tpu.memory_space<vmem>>, vector<2x1x128xbf16>,
    %c0_13 = arith.constant 0 : index
    %c0_14 = arith.constant 0 : index
    %c0_15 = arith.constant 0 : index
    %45 = vector.load %arg1[%c0_13, %c0_14, %c0_15] : memref<2x16x128xf32, #tpu.memory_space<vmem>>, vector<2x16x128xf32>
    %46 = arith.truncf %45 : vector<2x16x128xf32> to vector<2x16x128xbf16>
    %c0_16 = arith.constant 0 : index
    %c1 = arith.constant 1 : index
    %c0_17 = arith.constant 0 : index
    %47 = vector.load %arg6[%c0_16, %c1, %c0_17] : memref<2x18x128xbf16, #tpu.memory_space<vmem>>, vector<2x16x128xbf16>
    tpu.vector_store %arg6[%c0_16, %c1, %c0_17], %46 {strides = array<i32>} : memref<2x18x128xbf16, #tpu.memory_space<vmem>>, vector<2x16x128xbf16>,
    %c0_18 = arith.constant 0 : index
    %c0_19 = arith.constant 0 : index
    %48 = vector.load %arg4[%c0_18, %c0_19] : memref<4x8xf32, #tpu.memory_space<vmem>>, vector<1x8xf32>
    %c1_20 = arith.constant 1 : index
    %c0_21 = arith.constant 0 : index
    %49 = vector.load %arg4[%c1_20, %c0_21] : memref<4x8xf32, #tpu.memory_space<vmem>>, vector<1x8xf32>
    %c2 = arith.constant 2 : index
    %c0_22 = arith.constant 0 : index
    %50 = vector.load %arg4[%c2, %c0_22] : memref<4x8xf32, #tpu.memory_space<vmem>>, vector<1x8xf32>
    %c3 = arith.constant 3 : index
    %c0_23 = arith.constant 0 : index
    %51 = vector.load %arg4[%c3, %c0_23] : memref<4x8xf32, #tpu.memory_space<vmem>>, vector<1x8xf32>
    %c0_24 = arith.constant 0 : index
    %c0_25 = arith.constant 0 : index
    %c0_26 = arith.constant 0 : index
    %52 = vector.load %arg6[%c0_24, %c0_25, %c0_26] : memref<2x18x128xbf16, #tpu.memory_space<vmem>>, vector<2x16x128xbf16>
    %53 = vector.shape_cast %52 : vector<2x16x128xbf16> to vector<32x128xbf16>
    %c0_27 = arith.constant 0 : index
    %c0_28 = arith.constant 0 : index
    %c0_29 = arith.constant 0 : index
    %54 = vector.load %arg2[%c0_27, %c0_28, %c0_29] : memref<3x128x128xbf16, #tpu.memory_space<vmem>>, vector<1x128x128xbf16>
    %55 = vector.shape_cast %54 : vector<1x128x128xbf16> to vector<128x128xbf16>
    %cst_30 = arith.constant dense<0.000000e+00> : vector<32x128xf32>
    %56 = tpu.matmul %53, %55, %cst_30 {dimension_numbers = #tpu.dot_dimension_numbers<[1], [0], [0], [1], [0, 0, 1, 1], [], []>} : vector<32x128xbf16>, vector<128x128xbf16>, vector<32x128xf32> -> vector<32x128xf32>
    %c0_31 = arith.constant 0 : index
    %c1_32 = arith.constant 1 : index
    %c0_33 = arith.constant 0 : index
    %57 = vector.load %arg6[%c0_31, %c1_32, %c0_33] : memref<2x18x128xbf16, #tpu.memory_space<vmem>>, vector<2x16x128xbf16>
    %58 = vector.shape_cast %57 : vector<2x16x128xbf16> to vector<32x128xbf16>
    %c1_34 = arith.constant 1 : index
    %c0_35 = arith.constant 0 : index
    %c0_36 = arith.constant 0 : index
    %59 = vector.load %arg2[%c1_34, %c0_35, %c0_36] : memref<3x128x128xbf16, #tpu.memory_space<vmem>>, vector<1x128x128xbf16>
    %60 = vector.shape_cast %59 : vector<1x128x128xbf16> to vector<128x128xbf16>
    %cst_37 = arith.constant dense<0.000000e+00> : vector<32x128xf32>
    %61 = tpu.matmul %58, %60, %cst_37 {dimension_numbers = #tpu.dot_dimension_numbers<[1], [0], [0], [1], [0, 0, 1, 1], [], []>} : vector<32x128xbf16>, vector<128x128xbf16>, vector<32x128xf32> -> vector<32x128xf32>
    %62 = arith.addf %56, %61 : vector<32x128xf32>
    %c0_38 = arith.constant 0 : index
    %c2_39 = arith.constant 2 : index
    %c0_40 = arith.constant 0 : index
    %63 = vector.load %arg6[%c0_38, %c2_39, %c0_40] : memref<2x18x128xbf16, #tpu.memory_space<vmem>>, vector<2x16x128xbf16>
    %64 = vector.shape_cast %63 : vector<2x16x128xbf16> to vector<32x128xbf16>
    %c2_41 = arith.constant 2 : index
    %c0_42 = arith.constant 0 : index
    %c0_43 = arith.constant 0 : index
    %65 = vector.load %arg2[%c2_41, %c0_42, %c0_43] : memref<3x128x128xbf16, #tpu.memory_space<vmem>>, vector<1x128x128xbf16>
    %66 = vector.shape_cast %65 : vector<1x128x128xbf16> to vector<128x128xbf16>
    %cst_44 = arith.constant dense<0.000000e+00> : vector<32x128xf32>
    %67 = tpu.matmul %64, %66, %cst_44 {dimension_numbers = #tpu.dot_dimension_numbers<[1], [0], [0], [1], [0, 0, 1, 1], [], []>} : vector<32x128xbf16>, vector<128x128xbf16>, vector<32x128xf32> -> vector<32x128xf32>
    %68 = arith.addf %62, %67 : vector<32x128xf32>
    %cst_45 = arith.constant dense<0.000000e+00> : vector<128xf32>
    %69 = vector.multi_reduction <add>, %68, %cst_45 [0] : vector<32x128xf32> to vector<128xf32>
    %70 = vector.shape_cast %69 : vector<128xf32> to vector<1x128xf32>
    %71 = arith.mulf %68, %68 : vector<32x128xf32>
    %cst_46 = arith.constant dense<0.000000e+00> : vector<128xf32>
    %72 = vector.multi_reduction <add>, %71, %cst_46 [0] : vector<32x128xf32> to vector<128xf32>
    %73 = vector.shape_cast %72 : vector<128xf32> to vector<1x128xf32>
    %cst_47 = arith.constant dense<0.000000e+00> : vector<1x8xf32>
    %74 = tpu.matmul %70, %20, %cst_47 {dimension_numbers = #tpu.dot_dimension_numbers<[1], [0], [0], [1], [0, 0, 1, 1], [], []>} : vector<1x128xf32>, vector<128x8xf32>, vector<1x8xf32> -> vector<1x8xf32>
    %cst_48 = arith.constant 0.001953125 : f32
    %75 = vector.broadcast %cst_48 : f32 to vector<1x8xf32>
    %76 = arith.mulf %74, %75 : vector<1x8xf32>
    %cst_49 = arith.constant dense<0.000000e+00> : vector<1x8xf32>
    %77 = tpu.matmul %73, %20, %cst_49 {dimension_numbers = #tpu.dot_dimension_numbers<[1], [0], [0], [1], [0, 0, 1, 1], [], []>} : vector<1x128xf32>, vector<128x8xf32>, vector<1x8xf32> -> vector<1x8xf32>
    %cst_50 = arith.constant 0.001953125 : f32
    %78 = vector.broadcast %cst_50 : f32 to vector<1x8xf32>
    %79 = arith.mulf %77, %78 : vector<1x8xf32>
    %80 = arith.mulf %76, %76 : vector<1x8xf32>
    %81 = arith.subf %79, %80 : vector<1x8xf32>
    %cst_51 = arith.constant 9.99999974E-6 : f32
    %82 = vector.broadcast %cst_51 : f32 to vector<1x8xf32>
    %83 = arith.addf %81, %82 : vector<1x8xf32>
    %84 = math.rsqrt %83 : vector<1x8xf32>
    %85 = arith.mulf %48, %84 : vector<1x8xf32>
    %86 = arith.mulf %76, %85 : vector<1x8xf32>
    %87 = arith.subf %49, %86 : vector<1x8xf32>
    %cst_52 = arith.constant dense<0.000000e+00> : vector<1x128xf32>
    %88 = tpu.matmul %85, %41, %cst_52 {dimension_numbers = #tpu.dot_dimension_numbers<[1], [0], [0], [1], [0, 0, 1, 1], [], []>} : vector<1x8xf32>, vector<8x128xf32>, vector<1x128xf32> -> vector<1x128xf32>
    %89 = vector.broadcast %88 : vector<1x128xf32> to vector<32x128xf32>
    %90 = arith.mulf %68, %89 : vector<32x128xf32>
    %cst_53 = arith.constant dense<0.000000e+00> : vector<1x128xf32>
    %91 = tpu.matmul %87, %41, %cst_53 {dimension_numbers = #tpu.dot_dimension_numbers<[1], [0], [0], [1], [0, 0, 1, 1], [], []>} : vector<1x8xf32>, vector<8x128xf32>, vector<1x128xf32> -> vector<1x128xf32>
    %92 = vector.broadcast %91 : vector<1x128xf32> to vector<32x128xf32>
    %93 = arith.addf %90, %92 : vector<32x128xf32>
    %cst_54 = arith.constant 0.000000e+00 : f32
    %94 = vector.broadcast %cst_54 : f32 to vector<32x128xf32>
    %95 = arith.maximumf %93, %94 : vector<32x128xf32>
    %96 = vector.shape_cast %95 : vector<32x128xf32> to vector<2x16x128xf32>
    %97 = arith.truncf %96 : vector<2x16x128xf32> to vector<2x16x128xbf16>
    %c0_55 = arith.constant 0 : index
    %c1_56 = arith.constant 1 : index
    %c0_57 = arith.constant 0 : index
    %98 = vector.load %arg6[%c0_55, %c1_56, %c0_57] : memref<2x18x128xbf16, #tpu.memory_space<vmem>>, vector<2x16x128xbf16>
    tpu.vector_store %arg6[%c0_55, %c1_56, %c0_57], %97 {strides = array<i32>} : memref<2x18x128xbf16, #tpu.memory_space<vmem>>, vector<2x16x128xbf16>,
    %c0_58 = arith.constant 0 : index
    %c0_59 = arith.constant 0 : index
    %c0_60 = arith.constant 0 : index
    %99 = vector.load %arg6[%c0_58, %c0_59, %c0_60] : memref<2x18x128xbf16, #tpu.memory_space<vmem>>, vector<2x16x128xbf16>
    %100 = vector.shape_cast %99 : vector<2x16x128xbf16> to vector<32x128xbf16>
    %c0_61 = arith.constant 0 : index
    %c0_62 = arith.constant 0 : index
    %c0_63 = arith.constant 0 : index
    %101 = vector.load %arg3[%c0_61, %c0_62, %c0_63] : memref<3x128x128xbf16, #tpu.memory_space<vmem>>, vector<1x128x128xbf16>
    %102 = vector.shape_cast %101 : vector<1x128x128xbf16> to vector<128x128xbf16>
    %cst_64 = arith.constant dense<0.000000e+00> : vector<32x128xf32>
    %103 = tpu.matmul %100, %102, %cst_64 {dimension_numbers = #tpu.dot_dimension_numbers<[1], [0], [0], [1], [0, 0, 1, 1], [], []>} : vector<32x128xbf16>, vector<128x128xbf16>, vector<32x128xf32> -> vector<32x128xf32>
    %c0_65 = arith.constant 0 : index
    %c1_66 = arith.constant 1 : index
    %c0_67 = arith.constant 0 : index
    %104 = vector.load %arg6[%c0_65, %c1_66, %c0_67] : memref<2x18x128xbf16, #tpu.memory_space<vmem>>, vector<2x16x128xbf16>
    %105 = vector.shape_cast %104 : vector<2x16x128xbf16> to vector<32x128xbf16>
    %c1_68 = arith.constant 1 : index
    %c0_69 = arith.constant 0 : index
    %c0_70 = arith.constant 0 : index
    %106 = vector.load %arg3[%c1_68, %c0_69, %c0_70] : memref<3x128x128xbf16, #tpu.memory_space<vmem>>, vector<1x128x128xbf16>
    %107 = vector.shape_cast %106 : vector<1x128x128xbf16> to vector<128x128xbf16>
    %cst_71 = arith.constant dense<0.000000e+00> : vector<32x128xf32>
    %108 = tpu.matmul %105, %107, %cst_71 {dimension_numbers = #tpu.dot_dimension_numbers<[1], [0], [0], [1], [0, 0, 1, 1], [], []>} : vector<32x128xbf16>, vector<128x128xbf16>, vector<32x128xf32> -> vector<32x128xf32>
    %109 = arith.addf %103, %108 : vector<32x128xf32>
    %c0_72 = arith.constant 0 : index
    %c2_73 = arith.constant 2 : index
    %c0_74 = arith.constant 0 : index
    %110 = vector.load %arg6[%c0_72, %c2_73, %c0_74] : memref<2x18x128xbf16, #tpu.memory_space<vmem>>, vector<2x16x128xbf16>
    %111 = vector.shape_cast %110 : vector<2x16x128xbf16> to vector<32x128xbf16>
    %c2_75 = arith.constant 2 : index
    %c0_76 = arith.constant 0 : index
    %c0_77 = arith.constant 0 : index
    %112 = vector.load %arg3[%c2_75, %c0_76, %c0_77] : memref<3x128x128xbf16, #tpu.memory_space<vmem>>, vector<1x128x128xbf16>
    %113 = vector.shape_cast %112 : vector<1x128x128xbf16> to vector<128x128xbf16>
    %cst_78 = arith.constant dense<0.000000e+00> : vector<32x128xf32>
    %114 = tpu.matmul %111, %113, %cst_78 {dimension_numbers = #tpu.dot_dimension_numbers<[1], [0], [0], [1], [0, 0, 1, 1], [], []>} : vector<32x128xbf16>, vector<128x128xbf16>, vector<32x128xf32> -> vector<32x128xf32>
    %115 = arith.addf %109, %114 : vector<32x128xf32>
    %cst_79 = arith.constant dense<0.000000e+00> : vector<128xf32>
    %116 = vector.multi_reduction <add>, %115, %cst_79 [0] : vector<32x128xf32> to vector<128xf32>
    %117 = vector.shape_cast %116 : vector<128xf32> to vector<1x128xf32>
    %118 = arith.mulf %115, %115 : vector<32x128xf32>
    %cst_80 = arith.constant dense<0.000000e+00> : vector<128xf32>
    %119 = vector.multi_reduction <add>, %118, %cst_80 [0] : vector<32x128xf32> to vector<128xf32>
    %120 = vector.shape_cast %119 : vector<128xf32> to vector<1x128xf32>
    %cst_81 = arith.constant dense<0.000000e+00> : vector<1x8xf32>
    %121 = tpu.matmul %117, %20, %cst_81 {dimension_numbers = #tpu.dot_dimension_numbers<[1], [0], [0], [1], [0, 0, 1, 1], [], []>} : vector<1x128xf32>, vector<128x8xf32>, vector<1x8xf32> -> vector<1x8xf32>
    %cst_82 = arith.constant 0.001953125 : f32
    %122 = vector.broadcast %cst_82 : f32 to vector<1x8xf32>
    %123 = arith.mulf %121, %122 : vector<1x8xf32>
    %cst_83 = arith.constant dense<0.000000e+00> : vector<1x8xf32>
    %124 = tpu.matmul %120, %20, %cst_83 {dimension_numbers = #tpu.dot_dimension_numbers<[1], [0], [0], [1], [0, 0, 1, 1], [], []>} : vector<1x128xf32>, vector<128x8xf32>, vector<1x8xf32> -> vector<1x8xf32>
    %cst_84 = arith.constant 0.001953125 : f32
    %125 = vector.broadcast %cst_84 : f32 to vector<1x8xf32>
    %126 = arith.mulf %124, %125 : vector<1x8xf32>
    %127 = arith.mulf %123, %123 : vector<1x8xf32>
    %128 = arith.subf %126, %127 : vector<1x8xf32>
    %cst_85 = arith.constant 9.99999974E-6 : f32
    %129 = vector.broadcast %cst_85 : f32 to vector<1x8xf32>
    %130 = arith.addf %128, %129 : vector<1x8xf32>
    %131 = math.rsqrt %130 : vector<1x8xf32>
    %132 = arith.mulf %50, %131 : vector<1x8xf32>
    %133 = arith.mulf %123, %132 : vector<1x8xf32>
    %134 = arith.subf %51, %133 : vector<1x8xf32>
    %cst_86 = arith.constant dense<0.000000e+00> : vector<1x128xf32>
    %135 = tpu.matmul %132, %41, %cst_86 {dimension_numbers = #tpu.dot_dimension_numbers<[1], [0], [0], [1], [0, 0, 1, 1], [], []>} : vector<1x8xf32>, vector<8x128xf32>, vector<1x128xf32> -> vector<1x128xf32>
    %136 = vector.broadcast %135 : vector<1x128xf32> to vector<32x128xf32>
    %137 = arith.mulf %115, %136 : vector<32x128xf32>
    %cst_87 = arith.constant dense<0.000000e+00> : vector<1x128xf32>
    %138 = tpu.matmul %134, %41, %cst_87 {dimension_numbers = #tpu.dot_dimension_numbers<[1], [0], [0], [1], [0, 0, 1, 1], [], []>} : vector<1x8xf32>, vector<8x128xf32>, vector<1x128xf32> -> vector<1x128xf32>
    %139 = vector.broadcast %138 : vector<1x128xf32> to vector<32x128xf32>
    %140 = arith.addf %137, %139 : vector<32x128xf32>
    %c0_88 = arith.constant 0 : index
    %c0_89 = arith.constant 0 : index
    %c0_90 = arith.constant 0 : index
    %141 = vector.load %arg1[%c0_88, %c0_89, %c0_90] : memref<2x16x128xf32, #tpu.memory_space<vmem>>, vector<2x16x128xf32>
    %142 = vector.shape_cast %140 : vector<32x128xf32> to vector<2x16x128xf32>
    %143 = arith.addf %141, %142 : vector<2x16x128xf32>
    %c0_91 = arith.constant 0 : index
    %c0_92 = arith.constant 0 : index
    %c0_93 = arith.constant 0 : index
    %144 = vector.load %arg5[%c0_91, %c0_92, %c0_93] : memref<2x16x128xf32, #tpu.memory_space<vmem>>, vector<2x16x128xf32>
    tpu.vector_store %arg5[%c0_91, %c0_92, %c0_93], %143 {strides = array<i32>} : memref<2x16x128xf32, #tpu.memory_space<vmem>>, vector<2x16x128xf32>,
    return
  }
  func.func @transform_0(%arg0: i32) -> (i32, i32, i32) {
    %c0_i32 = arith.constant 0 : i32
    %c0_i32_0 = arith.constant 0 : i32
    %c0_i32_1 = arith.constant 0 : i32
    %c0_i32_2 = arith.constant 0 : i32
    return %c0_i32, %c0_i32_0, %c0_i32_1 : i32, i32, i32
  }
  func.func @transform_1(%arg0: i32) -> (i32, i32, i32) {
    %c0_i32 = arith.constant 0 : i32
    %c0_i32_0 = arith.constant 0 : i32
    %c0_i32_1 = arith.constant 0 : i32
    %c0_i32_2 = arith.constant 0 : i32
    return %c0_i32, %c0_i32_0, %c0_i32_1 : i32, i32, i32
  }
  func.func @transform_2(%arg0: i32) -> (i32, i32, i32) {
    %c0_i32 = arith.constant 0 : i32
    %c0_i32_0 = arith.constant 0 : i32
    %c0_i32_1 = arith.constant 0 : i32
    %c0_i32_2 = arith.constant 0 : i32
    return %c0_i32, %c0_i32_0, %c0_i32_1 : i32, i32, i32
  }
  func.func @transform_3(%arg0: i32) -> (i32, i32) {
    %c0_i32 = arith.constant 0 : i32
    %c0_i32_0 = arith.constant 0 : i32
    %c0_i32_1 = arith.constant 0 : i32
    return %c0_i32, %c0_i32_0 : i32, i32
  }
  func.func @transform_4(%arg0: i32) -> (i32, i32, i32) {
    %c0_i32 = arith.constant 0 : i32
    %c0_i32_0 = arith.constant 0 : i32
    %c0_i32_1 = arith.constant 0 : i32
    %c0_i32_2 = arith.constant 0 : i32
    return %c0_i32, %c0_i32_0, %c0_i32_1 : i32, i32, i32
  }
}

</mosaic_0001>

<bundles_post_ra>
// kernel: tpu_custom_call.1
= control target key start
LH: loop header
LB: loop body
LE: loop exit
PB: predicated region body
PF: predicated region fallthrough
CT: control target
= control target key end

     0   :  { %9 = vsyncpa [#allocation4], 0  ;;  %s3554_s0 = inlined_call_operand.hbm [shape: f32[2,16,128], index: 0, kind: input, shape index: {}]   ;;  %s3555_s1 = inlined_call_operand.hbm [shape: bf16[3,128,128], index: 1, kind: input, shape index: {}]   ;;  %s3556_s2 = inlined_call_operand.hbm [shape: bf16[3,128,128], index: 2, kind: input, shape index: {}]   ;;  %s3557_s3 = inlined_call_operand.vmem [shape: f32[4,8], index: 3, kind: input, shape index: {}]   ;;  %s3558_s4 = inlined_call_operand.hbm [shape: f32[2,16,128], index: 4, kind: output, shape index: {}]  }
   0x1   :  { %10 = vsyncpa [#allocation7], 0 }
   0x2   :  { %11 = vsyncpa [#allocation5], 0  ;;  %s2955_s15 = smov [#allocation6]   ;;  %s2861_s19 = scalar_lea.hbm %s3555_s1, 3072 }
   0x3   :  { %s29_s16 = sshll.u32 %s2955_s15, 4  ;;  %p2862_p0 = scmp.ne.s32.totalorder %s3555_s1, %s2861_s19  ;;  %s30_s16 = int_to_ptr.vmem [resolvable:$true] %s29_s16 }
   0x4   :  { %p2865_p1 = scmp.lt.u32.totalorder %s2861_s19, %s3555_s1 }
   0x6   :  { %p2867_p2 = pnand %p2865_p1, %p2862_p0 }
   0x8   :  { %2870 = shalt.err (!%p2867_p2)
}
   0x9   :  { %s2871_s24 = scalar_lea.vmem %s30_s16, 3072  ;;  %p2876_p4 = scmp.lt.s32.totalorder %s30_s16, %s30_s16 }
   0xa   :  { %p2872_p3 = scmp.ne.s32.totalorder %s30_s16, %s2871_s24  ;;  %p2877_p5 = scmp.lt.s32.totalorder %s2871_s24, %s2871_s24 }
   0xc   :  { %p2878_p6 = por %p2877_p5, %p2876_p4 }
   0xe   :  { %p2879_p7 = pnand %p2878_p6, %p2872_p3 }
  0x10   :  { %2882 = shalt.err (!%p2879_p7)
}
  0x11   :  { %s2956_s25 = smov 64   ;;  %s2957_s26 = smov 4  }
  0x12   :  { %35 = dma.hbm_to_vmem [thread:$0]  %s3555_s1, 3072, %s30_s16, [#allocation7], %s2956_s25, %s2956_s25, %s2957_s26  }
  0x13   :  { %s2958_s29 = smov [#allocation3]   ;;  %s2883_s7 = scalar_lea.hbm %s3554_s0, 512 }
  0x14   :  { %s17_s30 = sshll.u32 %s2958_s29, 4  ;;  %p2884_p8 = scmp.ne.s32.totalorder %s3554_s0, %s2883_s7  ;;  %s18_s30 = int_to_ptr.vmem [resolvable:$true] %s17_s30 }
  0x15   :  { %p2887_p9 = scmp.lt.u32.totalorder %s2883_s7, %s3554_s0 }
  0x17   :  { %p2889_p10 = pnand %p2887_p9, %p2884_p8 }
  0x19   :  { %2892 = shalt.err (!%p2889_p10)
}
  0x1a   :  { %s2893_s12 = scalar_lea.vmem %s18_s30, 512  ;;  %p2898_p12 = scmp.lt.s32.totalorder %s18_s30, %s18_s30 }
  0x1b   :  { %p2894_p11 = scmp.ne.s32.totalorder %s18_s30, %s2893_s12  ;;  %p2899_p13 = scmp.lt.s32.totalorder %s2893_s12, %s2893_s12 }
  0x1d   :  { %p2900_p0 = por %p2899_p13, %p2898_p12 }
  0x1f   :  { %p2901_p1 = pnand %p2900_p0, %p2894_p11 }
  0x21   :  { %2904 = shalt.err (!%p2901_p1)
}
  0x22   :  { %s2959_s1 = smov 128   ;;  %s2960_s13 = smov 8  }
  0x23   :  { %23 = dma.hbm_to_vmem [thread:$0]  %s3554_s0, 512, %s18_s30, [#allocation4], %s2959_s1, %s2959_s1, %s2960_s13  }
  0x24   :  { %s2961_s16 = smov [#allocation8]   ;;  %s2905_s20 = scalar_lea.hbm %s3556_s2, 3072 }
  0x25   :  { %s41_s17 = sshll.u32 %s2961_s16, 4  ;;  %p2906_p2 = scmp.ne.s32.totalorder %s3556_s2, %s2905_s20  ;;  %s42_s17 = int_to_ptr.vmem [resolvable:$true] %s41_s17 }
  0x26   :  { %p2909_p3 = scmp.lt.u32.totalorder %s2905_s20, %s3556_s2 }
  0x28   :  { %p2911_p4 = pnand %p2909_p3, %p2906_p2 }
  0x2a   :  { %2914 = shalt.err (!%p2911_p4)
}
  0x2b   :  { %s2915_s27 = scalar_lea.vmem %s42_s17, 3072  ;;  %p2920_p6 = scmp.lt.s32.totalorder %s42_s17, %s42_s17 }
  0x2c   :  { %p2916_p5 = scmp.ne.s32.totalorder %s42_s17, %s2915_s27  ;;  %p2921_p7 = scmp.lt.s32.totalorder %s2915_s27, %s2915_s27 }
  0x2e   :  { %p2922_p8 = por %p2921_p7, %p2920_p6 }
  0x30   :  { %p2923_p9 = pnand %p2922_p8, %p2916_p5 }
  0x32   :  { %2926 = shalt.err (!%p2923_p9)
}
  0x33   :  { %47 = dma.hbm_to_vmem [thread:$0]  %s3556_s2, 3072, %s42_s17, [#allocation7], %s2956_s25, %s2956_s25, %s2957_s26  }
  0x34   :  { %2949 = dma.done.wait [#allocation4], 512  }
  0x35   :  { %2950 = vsyncadd [#allocation4], 4294966784 }
  0x36   :  { %2951 = dma.done.wait [#allocation7], 6144  }
  0x37   :  { %2952 = vsyncadd [#allocation7], 4294961152  ;;  %v60_v0 = vlaneseq  ;;  %v2962_v1 = vmov 0.0|0.0   ;;  %vm334_vm0 = vcmask 1040384   ;;  %vm335_vm1 = vsmask.f32 256 }
  0x38   :  { %2680 = vmatprep.subr.bf16.mxu1 %v2962_v1  ;;  %vm343_vm2 = vsmask.f32 7938  ;;  %v2805_v3 = vld [vmem:[#allocation6 + $0x40] sm:$0xff]   ;;  %v2806_v5 = vld [vmem:[#allocation6 + $0x48] sm:$0xff]   ;;  %vm367_vm3 = vsmask.f32 4368  ;;  %vm3050_vm4 = vmand %vm334_vm0, %vm335_vm1 }
  0x39   :  { %v3039_v2 = vshrl.u32 %v60_v0, 7  ;;  %v3042_v6 = vand.u32 127, %v60_v0  ;;  %2400 = vmatprep.subr.bf16.mxu0 %v2805_v3  ;;  %v2807_v11 = vld [vmem:[#allocation6 + $0x50] sm:$0xff]   ;;  %vm3057_vm5 = vmand %vm334_vm0, %vm343_vm2  ;;  %v2808_v18 = vld [vmem:[#allocation6 + $0x58] sm:$0xff]   ;;  %vm409_vm6 = vcmask 1043456  }
  0x3a   :  { %2401 = vmatpush3.bf16.msra.mxu0 %v2805_v3  ;;  %v337_v19 = vld [vmem:[#allocation2] sm:$0x1]  ;;  %v345_v20 = vld [vmem:[#allocation2 + $0x8] sm:$0x1]  ;;  %v351_v21 = vld [vmem:[#allocation3] sm:$0xff] }
  0x3b   :  { %v62_v4 = vadd.s32 8, %v3039_v2  ;;  %v63_v7 = vadd.s32 16, %v3039_v2  ;;  %v64_v8 = vadd.s32 24, %v3039_v2  ;;  %v81_v9 = vand.u32 7, %v3039_v2  ;;  %2402 = vmatprep.subr.bf16.mxu0 %v2806_v5  ;;  %v352_v27 = vld [vmem:[#allocation3 + $0x8] sm:$0xff]  ;;  %v2809_v30 = vld [vmem:[#allocation6 + $0x60] sm:$0xff]   ;;  %vm3121_vm15 = vmor %vm335_vm1, %vm367_vm3 }
  0x3c   :  { %v65_v10 = vadd.s32 32, %v3039_v2  ;;  %v66_v14 = vadd.s32 40, %v3039_v2  ;;  %v338_v25 = vsel %vm3050_vm4, 0, %v337_v19  ;;  %v346_v26 = vsel %vm3057_vm5, 0, %v345_v20  ;;  %v340_v32 = vld [vmem:[#allocation2 + $0xc] sm:$0x1]  ;;  %vm3127_vm0 = vmand %vm409_vm6, %vm343_vm2 }
  0x3d   :  { %v88_v12 = vand.u32 7, %v62_v4  ;;  %v95_v16 = vand.u32 7, %v63_v7  ;;  %v102_v17 = vand.u32 7, %v64_v8  ;;  %vm3062_vm7 = vcmp.eq.s32.totalorder %v81_v9, %v3042_v6  ;;  %339 = vst [vmem:[#allocation2] sm:$0x1] %v338_v25  ;;  %v353_v40 = vld [vmem:[#allocation3 + $0x10] sm:$0xff] }
  0x3e   :  { %2403 = vmatpush3.bf16.msra.mxu0 %v2806_v5  ;;  %v109_v24 = vand.u32 7, %v65_v10  ;;  %v2256_v28 = vpack.c.bf16 %v351_v21, %v351_v21  ;;  %v116_v29 = vand.u32 7, %v66_v14  ;;  %347 = vst [vmem:[#allocation2 + $0x8] sm:$0x1] %v346_v26  ;;  %v2257_v31 = vpack.c.bf16 %v352_v27, %v352_v27  ;;  %v348_v33 = vld [vmem:[#allocation2 + $0x14] sm:$0x1] }
  0x3f   :  { %2404 = vmatprep.subr.bf16.mxu0 %v2807_v11  ;;  %vm3067_vm8 = vcmp.eq.s32.totalorder %v88_v12, %v3042_v6  ;;  %vm3076_vm9 = vcmp.eq.s32.totalorder %v95_v16, %v3042_v6  ;;  %vm3081_vm10 = vcmp.eq.s32.totalorder %v102_v17, %v3042_v6  ;;  %v341_v38 = vsel %vm3050_vm4, 0, %v340_v32  ;;  %v354_v41 = vld [vmem:[#allocation3 + $0x18] sm:$0xff]  ;;  %v2810_v61 = vld [vmem:[#allocation6 + $0x68] sm:$0xff]   ;;  %v2842_v50 = vld [vmem:[#allocation8 + $0x10] sm:$0xff]  }
  0x40   :  { %v370_v36 = vshrl.u32 %v2256_v28, 16  ;;  %v373_v37 = vshll.u32 %v2256_v28, 16  ;;  %v349_v39 = vsel %vm3057_vm5, 0, %v348_v33  ;;  %vm3093_vm11 = vmpackc.low %vm3067_vm8, %vm3062_vm7  ;;  %v378_v43 = vshrl.u32 %v2257_v31, 16  ;;  %342 = vst [vmem:[#allocation2 + $0xc] sm:$0x1] %v341_v38 }
  0x41   :  { %v381_v44 = vshll.u32 %v2257_v31, 16  ;;  %350 = vst [vmem:[#allocation2 + $0x14] sm:$0x1] %v349_v39  ;;  %v2258_v45 = vpack.c.bf16 %v353_v40, %v353_v40  ;;  %v2259_v46 = vpack.c.bf16 %v354_v41, %v354_v41  ;;  %v2963_v47 = vmov 1.0|1.0   ;;  %vm3105_vm12 = vmpackc.low %vm3081_vm10, %vm3076_vm9  ;;  %v2812_v22 = vld [vmem:[#allocation6 + $0x78] sm:$0xff]  }
  0x42   :  { %2405 = vmatpush3.bf16.msra.mxu0 %v2807_v11  ;;  %2682 = vmatpush3.bf16.msk.msra.mxu1 %vm3093_vm11, %v2963_v47  ;;  %v372_v48 = vrot.slane %v370_v36, 7  ;;  %vm3110_vm13 = vcmp.eq.s32.totalorder %v109_v24, %v3042_v6  ;;  %vm3115_vm14 = vcmp.eq.s32.totalorder %v116_v29, %v3042_v6  ;;  %v380_v53 = vrot.slane %v378_v43, 7  ;;  %v2813_v31 = vld [vmem:[#allocation6] sm:$0xff]  }
  0x43   :  { %2406 = vmatprep.subr.bf16.mxu0 %v2808_v18  ;;  %2683 = vmatprep.subr.bf16.mxu1 %v2962_v1  ;;  %v387_v54 = vshrl.u32 %v2258_v45, 16  ;;  %v390_v55 = vshll.u32 %v2258_v45, 16  ;;  %v395_v56 = vshrl.u32 %v2259_v46, 16  ;;  %v398_v60 = vshll.u32 %v2259_v46, 16  ;;  %vm3138_vm1 = vmpackc.low %vm3115_vm14, %vm3110_vm13 }
  0x44   :  { %v375_v57 = vor.u32 %v373_v37, %v372_v48  ;;  %v376_v58 = vrot.slane %v372_v48, 4  ;;  %v383_v62 = vor.u32 %v381_v44, %v380_v53  ;;  %v385_v63 = vrot.slane %v380_v53, 4  ;;  %v411_v5 = vld [vmem:[#allocation2] sm:$0xf] }
  0x45   :  { %v389_v0 = vrot.slane %v387_v54, 7  ;;  %v397_v3 = vrot.slane %v395_v56, 7  ;;  %v415_v7 = vld [vmem:[#allocation2 + $0x8] sm:$0x1]  ;;  %vm451_vm2 = vsmask.f32 3328 }
  0x46   :  { %2407 = vmatpush3.bf16.msra.mxu0 %v2808_v18  ;;  %2685 = vmatpush3.bf16.msk.msra.mxu1 %vm3105_vm12, %v2963_v47  ;;  %v384_v8 = vsel %vm3121_vm15, %v376_v58, %v383_v62  ;;  %v412_v9 = vsel %vm3127_vm0, %v375_v57, %v411_v5  ;;  %v416_v10 = vsel %vm3050_vm4, %v385_v63, %v415_v7  ;;  %v2811_v18 = vld [vmem:[#allocation6 + $0x70] sm:$0xff]   ;;  %vm452_vm3 = vsmask.f32 7440 }
  0x47   :  { %2408 = vmatprep.subr.bf16.mxu0 %v2809_v30  ;;  %2686 = vmatprep.subr.bf16.mxu1 %v2962_v1  ;;  %v392_v11 = vor.u32 %v390_v55, %v389_v0  ;;  %413 = vst [vmem:[#allocation2] sm:$0xf] %v412_v9  ;;  %414 = vst [vmem:[#allocation2 + $0x4] sm:$0xf] %v384_v8  ;;  %v393_v12 = vrot.slane %v389_v0, 4  ;;  %v400_v14 = vor.u32 %v398_v60, %v397_v3  ;;  %v2814_v9 = vld [vmem:[#allocation6 + $0x8] sm:$0xff]  }
  0x48   :  { %417 = vst [vmem:[#allocation2 + $0x8] sm:$0x1] %v416_v10  ;;  %v402_v15 = vrot.slane %v397_v3, 4  ;;  %v418_v16 = vld [vmem:[#allocation2 + $0xc] sm:$0xf]  ;;  %vm3183_vm5 = vmor %vm451_vm2, %vm452_vm3  ;;  %vm739_vm6 = vcmask 1042432  }
  0x49   :  { %v422_v17 = vld [vmem:[#allocation2 + $0x14] sm:$0x1]  ;;  %v419_v19 = vsel %vm3127_vm0, %v392_v11, %v418_v16  ;;  %v401_v20 = vsel %vm3121_vm15, %v393_v12, %v400_v14  ;;  %v2815_v12 = vld [vmem:[#allocation6 + $0x10] sm:$0xff]   ;;  %v2818_v16 = vld [vmem:[#allocation6 + $0x28] sm:$0xff]   ;;  %vm740_vm7 = vcmask 1046532  }
  0x4a   :  { %2409 = vmatpush3.bf16.msra.mxu0 %v2809_v30  ;;  %2688 = vmatpush3.bf16.msk.msra.mxu1 %vm3138_vm1, %v2963_v47  ;;  %420 = vst [vmem:[#allocation2 + $0xc] sm:$0xf] %v419_v19  ;;  %v423_v21 = vsel %vm3050_vm4, %v402_v15, %v422_v17  ;;  %421 = vst [vmem:[#allocation2 + $0x10] sm:$0xf] %v401_v20  ;;  %v2816_v14 = vld [vmem:[#allocation6 + $0x18] sm:$0xff]   ;;  %v2817_v15 = vld [vmem:[#allocation6 + $0x20] sm:$0xff]  }
  0x4b   :  { %2410 = vmatprep.subr.bf16.mxu0 %v2810_v61  ;;  %2689 = vmatprep.subr.bf16.mxu1 %v2962_v1  ;;  %424 = vst [vmem:[#allocation2 + $0x14] sm:$0x1] %v423_v21  ;;  %v2819_v17 = vld [vmem:[#allocation6 + $0x30] sm:$0xff]   ;;  %v2820_v20 = vld [vmem:[#allocation6 + $0x38] sm:$0xff]   ;;  %vm3199_vm8 = vmor %vm739_vm6, %vm740_vm7 }
  0x4e   :  { %2411 = vmatpush3.bf16.msra.mxu0 %v2810_v61  ;;  %v3159_v23 = vld [vmem:[#allocation2] sm:$0xf]  ;;  %v3161_v24 = vld [vmem:[#allocation2 + $0x4] sm:$0xf] }
  0x4f   :  { %2412 = vmatprep.subr.bf16.mxu0 %v2811_v18  ;;  %v3163_v25 = vld [vmem:[#allocation2 + $0x8] sm:$0x1]  ;;  %v455_v26 = vshrl.u32 %v3159_v23, 16  ;;  %v458_v27 = vshll.u32 %v3159_v23, 16  ;;  %v464_v28 = vshll.u32 %v3161_v24, 16  ;;  %v468_v29 = vshrl.u32 %v3161_v24, 16 }
  0x50   :  { %v474_v30 = vshll.u32 %v3163_v25, 16  ;;  %v2126_v10 = vcombine.low %v3159_v23, %v3161_v24  ;;  %v733_v19 = vld [vmem:[#allocation2] sm:$0xe] }
  0x51   :  { %v3170_v32 = vld [vmem:[#allocation2 + $0xc] sm:$0xf]  ;;  %v457_v33 = vrot.slane %v455_v26, 4  ;;  %v460_v34 = vrot.slane %v458_v27, 5  ;;  %v466_v35 = vrot.slane %v464_v28, 5  ;;  %v470_v36 = vrot.slane %v468_v29, 4 }
  0x52   :  { %2413 = vmatpush3.bf16.msra.mxu0 %v2811_v18  ;;  %v3172_v37 = vld [vmem:[#allocation2 + $0x10] sm:$0xf]  ;;  %v476_v38 = vrot.slane %v474_v30, 5  ;;  %v3174_v39 = vld [vmem:[#allocation2 + $0x14] sm:$0x1]  ;;  %v479_v40 = vshrl.u32 %v3170_v32, 16 }
  0x53   :  { %2414 = vmatprep.subr.bf16.mxu0 %v2812_v22  ;;  %v482_v41 = vshll.u32 %v3170_v32, 16  ;;  %v488_v43 = vshll.u32 %v3172_v37, 16  ;;  %v461_v44 = vor.u32 %v460_v34, %v457_v33  ;;  %v471_v45 = vor.u32 %v470_v36, %v466_v35  ;;  %v2822_v28 = vld [vmem:[#allocation6 + $0x80] sm:$0xff]   ;;  %v2825_v33 = vld [vmem:[#allocation6 + $0x90] sm:$0xff]   ;;  %v2826_v34 = vld [vmem:[#allocation6 + $0x98] sm:$0xff]  }
  0x54   :  { %v492_v46 = vshrl.u32 %v3172_v37, 16  ;;  %v498_v48 = vshll.u32 %v3174_v39, 16  ;;  %v481_v51 = vrot.slane %v479_v40, 4  ;;  %v744_v18 = vrot.slane %v3161_v24, 5  ;;  %v2828_v36 = vld [vmem:[#allocation6 + $0xa8] sm:$0xff]   ;;  %v2855_v27 = vld [vmem:[#allocation8 + $0xb0] sm:$0xff]  }
  0x55   :  { %v484_v53 = vrot.slane %v482_v41, 5  ;;  %v490_v54 = vrot.slane %v488_v43, 5  ;;  %v462_v55 = vrot.slane %v461_v44, 4  ;;  %v472_v56 = vrot.slane %v471_v45, 4  ;;  %v734_v40 = vld [vmem:[#allocation2 + $0xc] sm:$0xe] }
  0x56   :  { %2415 = vmatpush3.bf16.msra.mxu0 %v2812_v22  ;;  %v494_v57 = vrot.slane %v492_v46, 4  ;;  %v500_v63 = vrot.slane %v498_v48, 5  ;;  %v2136_v21 = vrot.slane %v733_v19, 9  ;;  %v746_v22 = vrot.slane %v744_v18, 4  ;;  %v2830_v45 = vld [vmem:[#allocation6 + $0xb8] sm:$0xff]  }
  0x57   :  { %2420 = vmatprep.subr.bf16.mxu0 %v2813_v31  ;;  %v485_v58 = vor.u32 %v484_v53, %v481_v51  ;;  %v467_v60 = vsel %vm3183_vm5, %v462_v55, %v466_v35  ;;  %v477_v61 = vsel %vm3183_vm5, %v472_v56, %v476_v38  ;;  %v747_v26 = vrot.slane %v3163_v25, 5  ;;  %v2824_v25 = vld [vmem:[#allocation6 + $0x88] sm:$0xff]   ;;  %v2827_v35 = vld [vmem:[#allocation6 + $0xa0] sm:$0xff]   ;;  %v2829_v38 = vld [vmem:[#allocation6 + $0xb0] sm:$0xff]  }
  0x58   :  { %v495_v62 = vor.u32 %v494_v57, %v490_v54  ;;  %v2116_v0 = vcombine.low %v467_v60, %v477_v61  ;;  %v745_v24 = vsel %vm3199_vm8, %v2136_v21, %v744_v18  ;;  %v2127_v30 = vcombine.low %v3170_v32, %v3172_v37 }
  0x59   :  { %v486_v3 = vrot.slane %v485_v58, 4  ;;  %v748_v29 = vsel %vm3199_vm8, %v746_v22, %v747_v26  ;;  %v751_v32 = vrot.slane %v3172_v37, 5  ;;  %v2137_v41 = vrot.slane %v734_v40, 9 }
  0x5a   :  { %v496_v5 = vrot.slane %v495_v62, 4  ;;  %2416 = vmatprep.mubr.bf16.mxu0 %v2116_v0  ;;  %v754_v44 = vrot.slane %v3174_v39, 5  ;;  %v67_v37 = vadd.s32 48, %v3039_v2  ;;  %v68_v39 = vadd.s32 56, %v3039_v2 }
  0x5b   :  { %v491_v7 = vsel %vm3183_vm5, %v486_v3, %v490_v54  ;;  %v753_v43 = vrot.slane %v751_v32, 4  ;;  %v752_v46 = vsel %vm3199_vm8, %v2137_v41, %v751_v32  ;;  %v69_v55 = vadd.s32 64, %v3039_v2 }
  0x5c   :  { %v501_v8 = vsel %vm3183_vm5, %v496_v5, %v500_v63  ;;  %v123_v53 = vand.u32 7, %v67_v37  ;;  %v130_v54 = vand.u32 7, %v68_v39  ;;  %v70_v56 = vadd.s32 72, %v3039_v2 }
  0x5d   :  { %v2117_v11 = vcombine.low %v491_v7, %v501_v8  ;;  %v755_v48 = vsel %vm3199_vm8, %v753_v43, %v754_v44  ;;  %v137_v58 = vand.u32 7, %v69_v55  ;;  %v71_v61 = vadd.s32 80, %v3039_v2 }
  0x5e   :  { %v2139_v51 = vcombine.low %v752_v46, %v755_v48  ;;  %vm277_vm9 = vcmp.eq.s32.totalorder %v123_v53, %v3042_v6  ;;  %vm278_vm10 = vcmp.eq.s32.totalorder %v130_v54, %v3042_v6  ;;  %v144_v60 = vand.u32 7, %v70_v56 }
  0x5f   :  { %2417 = vmatmul.mubr.bf16.vlgmr.msra.gmra.mrb[0].mxu0 %v2117_v11  ;;  %vm3234_vm13 = vmpackc.low %vm278_vm10, %vm277_vm9  ;;  %vm279_vm14 = vcmp.eq.s32.totalorder %v137_v58, %v3042_v6  ;;  %v72_v62 = vadd.s32 88, %v3039_v2  ;;  %v151_v0 = vand.u32 7, %v71_v61  ;;  %v73_v5 = vadd.s32 96, %v3039_v2 }
  0x60   :  { %2421 = vmatpush3.bf16.msra.mxu0 %v2813_v31  ;;  %2436 = vmatprep.mubr.bf16.mxu0 %v2126_v10  ;;  %v2138_v31 = vcombine.low %v745_v24, %v748_v29  ;;  %vm280_vm2 = vcmp.eq.s32.totalorder %v144_v60, %v3042_v6  ;;  %v74_v7 = vadd.s32 104, %v3039_v2  ;;  %v75_v11 = vadd.s32 112, %v3039_v2 }
  0x61   :  { %2422 = vmatprep.subr.bf16.mxu0 %v2814_v9  ;;  %2691 = vmatpush3.bf16.msk.msra.mxu1 %vm3234_vm13, %v2963_v47  ;;  %vm3250_vm3 = vmpackc.low %vm280_vm2, %vm279_vm14  ;;  %v158_v3 = vand.u32 7, %v72_v62  ;;  %vm281_vm6 = vcmp.eq.s32.totalorder %v151_v0, %v3042_v6  ;;  %v323_v39 = vand.u32 7, %v3042_v6  ;;  %v2966_v54 = vmov 1.0  }
  0x62   :  { %2692 = vmatprep.subr.bf16.mxu1 %v2962_v1  ;;  %v172_v10 = vand.u32 7, %v74_v7 }
  0x63   :  { %vm282_vm7 = vcmp.eq.s32.totalorder %v158_v3, %v3042_v6 }
  0x64   :  { %2423 = vmatpush3.bf16.msra.mxu0 %v2814_v9  ;;  %vm3266_vm9 = vmpackc.low %vm282_vm7, %vm281_vm6  ;;  %v165_v9 = vand.u32 7, %v73_v5  ;;  %vm284_vm14 = vcmp.eq.s32.totalorder %v172_v10, %v3042_v6  ;;  %vm2964_vm6 = vmmov 0   ;;  %v425_v5 = vld [vmem:[%s3557_s3] sm:$0x1]  ;;  %v426_v10 = vld [vmem:[%s3557_s3 + $0x1] sm:$0x1] }
  0x65   :  { %2424 = vmatprep.subr.bf16.mxu0 %v2815_v12  ;;  %2694 = vmatpush3.bf16.msk.msra.mxu1 %vm3250_vm3, %v2963_v47 }
  0x66   :  { %2695 = vmatprep.subr.bf16.mxu1 %v2962_v1  ;;  %vm283_vm10 = vcmp.eq.s32.totalorder %v165_v9, %v3042_v6 }
  0x67   :  { %vm3282_vm2 = vmpackc.low %vm284_vm14, %vm283_vm10 }
  0x68   :  { %2425 = vmatpush3.bf16.msra.mxu0 %v2815_v12  ;;  %v76_v12 = vadd.s32 120, %v3039_v2 }
  0x69   :  { %2426 = vmatprep.subr.bf16.mxu0 %v2816_v14  ;;  %2697 = vmatpush3.bf16.msk.msra.mxu1 %vm3266_vm9, %v2963_v47 }
  0x6a   :  { %2698 = vmatprep.subr.bf16.mxu1 %v2962_v1 }
  0x6c   :  { %2427 = vmatpush3.bf16.msra.mxu0 %v2816_v14 }
  0x6d   :  { %2428 = vmatprep.subr.bf16.mxu0 %v2817_v15  ;;  %2700 = vmatpush3.bf16.msk.msra.mxu1 %vm3282_vm2, %v2963_v47 }
  0x6e   :  { %2701 = vmatprep.subr.bf16.mxu1 %v2962_v1 }
  0x70   :  { %2429 = vmatpush3.bf16.msra.mxu0 %v2817_v15  ;;  %v179_v15 = vand.u32 7, %v75_v11 }
  0x71   :  { %2430 = vmatprep.subr.bf16.mxu0 %v2818_v16 }
  0x72   :  { %vm285_vm7 = vcmp.eq.s32.totalorder %v179_v15, %v3042_v6  ;;  %v2831_v15 = vld [vmem:[#allocation8 + $0x40] sm:$0xff]  }
  0x74   :  { %2431 = vmatpush3.bf16.msra.mxu0 %v2818_v16  ;;  %v186_v16 = vand.u32 7, %v76_v12 }
  0x75   :  { %2432 = vmatprep.subr.bf16.mxu0 %v2819_v17 }
  0x76   :  { %vm286_vm10 = vcmp.eq.s32.totalorder %v186_v16, %v3042_v6  ;;  %v2832_v16 = vld [vmem:[#allocation8 + $0x48] sm:$0xff]  }
  0x77   :  { %vm3300_vm14 = vmpackc.low %vm286_vm10, %vm285_vm7  ;;  %vm3370_vm7 = vcmp.eq.s32.totalorder %v323_v39, %v3039_v2  ;;  %vm1053_vm10 = vcmask 64512  }
  0x78   :  { %2433 = vmatpush3.bf16.msra.mxu0 %v2819_v17  ;;  %v2965_v17 = vmov 0.0   ;;  %2703 = vmatpush3.bf16.msk.msra.mxu1 %vm3300_vm14, %v2963_v47 }
  0x79   :  { %2434 = vmatprep.subr.bf16.mxu0 %v2820_v20  ;;  %2492 = vmatprep.mubr.msk.f32.mxu1 %vm2964_vm6, %v2965_v17 }
  0x7a   :  { %2704 = vmatprep.subr.bf16.mxu1 %v2962_v1 }
  0x7c   :  { %2435 = vmatpush3.bf16.msra.mxu0 %v2820_v20 }
  0x7d   :  { %2440 = vmatprep.subr.bf16.mxu0 %v2822_v28 }
  0x7f   :  { %2437 = vmatmul.mubr.bf16.vlgmr.msra.gmra.mrb[0].mxu0 %v2127_v30 }
  0x80   :  { %2441 = vmatpush3.bf16.msra.mxu0 %v2822_v28  ;;  %2456 = vmatprep.mubr.bf16.mxu0 %v2138_v31 }
  0x81   :  { %2442 = vmatprep.subr.bf16.mxu0 %v2824_v25 }
  0x84   :  { %2443 = vmatpush3.bf16.msra.mxu0 %v2824_v25 }
  0x85   :  { %2444 = vmatprep.subr.bf16.mxu0 %v2825_v33 }
  0x88   :  { %2445 = vmatpush3.bf16.msra.mxu0 %v2825_v33 }
  0x89   :  { %2446 = vmatprep.subr.bf16.mxu0 %v2826_v34 }
  0x8c   :  { %2447 = vmatpush3.bf16.msra.mxu0 %v2826_v34 }
  0x8d   :  { %2448 = vmatprep.subr.bf16.mxu0 %v2827_v35 }
  0x90   :  { %2449 = vmatpush3.bf16.msra.mxu0 %v2827_v35 }
  0x91   :  { %2450 = vmatprep.subr.bf16.mxu0 %v2828_v36 }
  0x94   :  { %2451 = vmatpush3.bf16.msra.mxu0 %v2828_v36 }
  0x95   :  { %2452 = vmatprep.subr.bf16.mxu0 %v2829_v38 }
  0x98   :  { %2453 = vmatpush3.bf16.msra.mxu0 %v2829_v38 }
  0x99   :  { %2454 = vmatprep.subr.bf16.mxu0 %v2830_v45 }
  0x9c   :  { %2455 = vmatpush3.bf16.msra.mxu0 %v2830_v45 }
  0x9d   :  { %2728 = vmatprep.subr.bf16.mxu0 %v2962_v1 }
  0x9f   :  { %2457 = vmatmul.mubr.bf16.vlgmr.msra.gmra.mrb[0].mxu0 %v2139_v51 }
  0xa0   :  { %2730 = vmatpush3.bf16.msk.msra.mxu0 %vm3093_vm11, %v2963_v47  ;;  %2632 = vmatprep.mubr.msk.f32.mxu0 %vm2964_vm6, %v2965_v17 }
  0xa1   :  { %2731 = vmatprep.subr.bf16.mxu0 %v2962_v1 }
  0xa4   :  { %2733 = vmatpush3.bf16.msk.msra.mxu0 %vm3105_vm12, %v2963_v47 }
  0xa5   :  { %2734 = vmatprep.subr.bf16.mxu0 %v2962_v1 }
  0xa8   :  { %2736 = vmatpush3.bf16.msk.msra.mxu0 %vm3138_vm1, %v2963_v47 }
  0xa9   :  { %2737 = vmatprep.subr.bf16.mxu0 %v2962_v1 }
  0xac   :  { %2739 = vmatpush3.bf16.msk.msra.mxu0 %vm3234_vm13, %v2963_v47 }
  0xad   :  { %2740 = vmatprep.subr.bf16.mxu0 %v2962_v1 }
  0xb0   :  { %2742 = vmatpush3.bf16.msk.msra.mxu0 %vm3250_vm3, %v2963_v47 }
  0xb1   :  { %2743 = vmatprep.subr.bf16.mxu0 %v2962_v1 }
  0xb4   :  { %2745 = vmatpush3.bf16.msk.msra.mxu0 %vm3266_vm9, %v2963_v47 }
  0xb5   :  { %2746 = vmatprep.subr.bf16.mxu0 %v2962_v1 }
  0xb8   :  { %2748 = vmatpush3.bf16.msk.msra.mxu0 %vm3282_vm2, %v2963_v47 }
  0xb9   :  { %2749 = vmatprep.subr.bf16.mxu0 %v2962_v1 }
  0xbc   :  { %2751 = vmatpush3.bf16.msk.msra.mxu0 %vm3300_vm14, %v2963_v47 }
  0xbd   :  { %2752 = vmatprep.subr.bf16.mxu0 %v2962_v1 }
 0x172   :  { %v3312_v19 = vpop.f32.mrb[0].mxu0 }
 0x173   :  { %v3314_v20 = vpop.f32.mrb[1].mxu0  ;;  %v893_v29 = vmul.f32 %v3312_v19, %v3312_v19 }
 0x174   :  { %v3316_v21 = vpop.f32.mrb[2].mxu0  ;;  %v891_v26 = vmul.f32 %v3314_v20, %v3314_v20 }
 0x175   :  { %v3318_v22 = vpop.f32.mrb[3].mxu0  ;;  %v894_v25 = vmul.f32 %v3316_v21, %v3316_v21 }
 0x176   :  { %v882_v28 = vadd.f32 %v3318_v22, %v3314_v20  ;;  %v892_v24 = vmul.f32 %v3318_v22, %v3318_v22 }
 0x178   :  { %v883_v30 = vadd.f32 %v3312_v19, %v882_v28  ;;  %v895_v31 = vadd.f32 %v892_v24, %v891_v26  ;;  %v2833_v26 = vld [vmem:[#allocation8 + $0x50] sm:$0xff]   ;;  %v2834_v28 = vld [vmem:[#allocation8 + $0x58] sm:$0xff]   ;;  %v2835_v24 = vld [vmem:[#allocation8 + $0x60] sm:$0xff]  }
 0x17a   :  { %v884_v33 = vadd.f32 %v3316_v21, %v883_v30  ;;  %v896_v34 = vadd.f32 %v895_v31, %v893_v29  ;;  %v2836_v29 = vld [vmem:[#allocation8 + $0x68] sm:$0xff]   ;;  %v2837_v30 = vld [vmem:[#allocation8 + $0x70] sm:$0xff]   ;;  %v2838_v31 = vld [vmem:[#allocation8 + $0x78] sm:$0xff]  }
 0x17c   :  { %v885_v35 = vrot.slane %v884_v33, 4  ;;  %v897_v36 = vadd.f32 %v896_v34, %v894_v25  ;;  %v3391_v25 = vld [vmem:[#allocation8] sm:$0xff]  }
 0x17e   :  { %v886_v32 = vadd.f32 %v885_v35, %v884_v33  ;;  %v898_v44 = vrot.slane %v897_v36, 4  ;;  %v3395_v33 = vsub.s32 0, %v3039_v2 }
 0x180   :  { %v887_v38 = vrot.slane %v886_v32, 2  ;;  %v899_v45 = vadd.f32 %v898_v44, %v897_v36 }
 0x182   :  { %v888_v40 = vadd.f32 %v887_v38, %v886_v32  ;;  %v900_v46 = vrot.slane %v899_v45, 2 }
 0x184   :  { %v889_v41 = vrot.slane %v888_v40, 1  ;;  %v901_v48 = vadd.f32 %v900_v46, %v899_v45 }
 0x186   :  { %v890_v43 = vadd.f32 %v889_v41, %v888_v40  ;;  %v902_v51 = vrot.slane %v901_v48, 1 }
 0x188   :  { %2493 = vmatmul.mubr.f32.vlgmr.msra.gmra.mrb[0].mxu1 %v890_v43  ;;  %v903_v37 = vadd.f32 %v902_v51, %v901_v48 }
 0x189   :  { %2706 = vmatpush3.bf16.msk.msra.mxu1 %vm3093_vm11, %v2963_v47  ;;  %2527 = vmatprep.mubr.msk.f32.mxu1 %vm2964_vm6, %v2965_v17 }
 0x18a   :  { %2707 = vmatprep.subr.bf16.mxu1 %v2962_v1 }
 0x18d   :  { %2709 = vmatpush3.bf16.msk.msra.mxu1 %vm3105_vm12, %v2963_v47 }
 0x18e   :  { %2710 = vmatprep.subr.bf16.mxu1 %v2962_v1 }
 0x191   :  { %2712 = vmatpush3.bf16.msk.msra.mxu1 %vm3138_vm1, %v2963_v47 }
 0x192   :  { %2713 = vmatprep.subr.bf16.mxu1 %v2962_v1 }
 0x195   :  { %2715 = vmatpush3.bf16.msk.msra.mxu1 %vm3234_vm13, %v2963_v47 }
 0x196   :  { %2716 = vmatprep.subr.bf16.mxu1 %v2962_v1 }
 0x199   :  { %2718 = vmatpush3.bf16.msk.msra.mxu1 %vm3250_vm3, %v2963_v47 }
 0x19a   :  { %2719 = vmatprep.subr.bf16.mxu1 %v2962_v1 }
 0x19d   :  { %2721 = vmatpush3.bf16.msk.msra.mxu1 %vm3266_vm9, %v2963_v47 }
 0x19e   :  { %2722 = vmatprep.subr.bf16.mxu1 %v2962_v1 }
 0x1a1   :  { %2724 = vmatpush3.bf16.msk.msra.mxu1 %vm3282_vm2, %v2963_v47 }
 0x1a2   :  { %2725 = vmatprep.subr.bf16.mxu1 %v2962_v1 }
 0x1a5   :  { %2727 = vmatpush3.bf16.msk.msra.mxu1 %vm3300_vm14, %v2963_v47 }
 0x1a6   :  { %2530 = vmatprep.subr.mxu1 %v2965_v17 }
 0x1a8   :  { %2528 = vmatmul.mubr.f32.vlgmr.msra.gmra.mrb[2].mxu1 %v903_v37 }
 0x1a9   :  { %2532 = vmatprep.mubr.msk.f32.mxu1 %vm2964_vm6, %v2965_v17  ;;  %2531 = vmatpush3.msk.msra.mxu1 %vm3370_vm7, %v2966_v54 }
 0x1aa   :  { %2535 = vmatprep.subr.mxu1 %v2965_v17 }
 0x25b   :  { %v970_v55 = vpop.f32.mrb[0].mxu1 }
 0x25c   :  { %v2494_v56 = vpop.f32.mrb[1].mxu1  ;;  %v974_v58 = vmul.f32 0.001953125, %v970_v55 }
 0x25e   :  { %v1046_v61 = vmul.f32 %v974_v58, %v974_v58 }
 0x27b   :  { %v1041_v60 = vpop.f32.mrb[2].mxu1 }
 0x27c   :  { %v1045_v62 = vmul.f32 0.001953125, %v1041_v60  ;;  %v2529_v0 = vpop.f32.mrb[3].mxu1 }
 0x27e   :  { %v1047_v6 = vsub.f32 %v1045_v62, %v1046_v61 }
 0x280   :  { %v1048_v3 = vadd.f32 1e-05, %v1047_v6 }
 0x282   :  { %2857 = vrsqrt.f32 %v1048_v3 }
 0x28c   :  { %v2858_v7 = vpop.eup %2857 }
 0x28d   :  { %v1050_v9 = vmul.f32 %v2858_v7, %v425_v5 }
 0x28f   :  { %2533 = vmatmul.mubr.msk.f32.vlgmr.msra.gmra.mrb[4].mxu1 %vm1053_vm10, %v1050_v9  ;;  %v1051_v11 = vmul.f32 %v1050_v9, %v974_v58 }
 0x290   :  { %2536 = vmatpush3.msk.msra.mxu1 %vm3370_vm7, %v2966_v54  ;;  %2537 = vmatprep.mubr.msk.f32.mxu1 %vm2964_vm6, %v2965_v17 }
 0x291   :  { %v1052_v12 = vsub.f32 %v426_v10, %v1051_v11  ;;  %2540 = vmatprep.subr.bf16.mxu1 %v2831_v15 }
 0x293   :  { %2538 = vmatmul.mubr.msk.f32.vlgmr.msra.gmra.mrb[6].mxu1 %vm1053_vm10, %v1052_v12  ;;  %v1275_v12 = vld [vmem:[#allocation2 + $0x8] sm:$0x1] }
 0x294   :  { %2541 = vmatpush3.bf16.msra.mxu1 %v2831_v15 }
 0x295   :  { %2542 = vmatprep.subr.bf16.mxu1 %v2832_v16 }
 0x298   :  { %2543 = vmatpush3.bf16.msra.mxu1 %v2832_v16 }
 0x299   :  { %2544 = vmatprep.subr.bf16.mxu1 %v2833_v26 }
 0x29c   :  { %2545 = vmatpush3.bf16.msra.mxu1 %v2833_v26 }
 0x29d   :  { %2546 = vmatprep.subr.bf16.mxu1 %v2834_v28 }
 0x2a0   :  { %2547 = vmatpush3.bf16.msra.mxu1 %v2834_v28 }
 0x2a1   :  { %2548 = vmatprep.subr.bf16.mxu1 %v2835_v24 }
 0x2a4   :  { %2549 = vmatpush3.bf16.msra.mxu1 %v2835_v24  ;;  %v1278_v24 = vld [vmem:[#allocation2 + $0xc] sm:$0xf] }
 0x2a5   :  { %2550 = vmatprep.subr.bf16.mxu1 %v2836_v29 }
 0x2a8   :  { %2551 = vmatpush3.bf16.msra.mxu1 %v2836_v29  ;;  %v1282_v29 = vld [vmem:[#allocation2 + $0x14] sm:$0x1] }
 0x2a9   :  { %2552 = vmatprep.subr.bf16.mxu1 %v2837_v30 }
 0x2ac   :  { %2553 = vmatpush3.bf16.msra.mxu1 %v2837_v30 }
 0x2ad   :  { %2554 = vmatprep.subr.bf16.mxu1 %v2838_v31 }
 0x2b0   :  { %2555 = vmatpush3.bf16.msra.mxu1 %v2838_v31 }
 0x2b1   :  { %2560 = vmatprep.subr.bf16.mxu1 %v3391_v25 }
 0x362   :  { %v1123_v34 = vpop.f32.mrb[4].mxu1 }
 0x363   :  { %v1130_v35 = vrot.slane %v1123_v34, %v3395_v33  ;;  %v2534_v36 = vpop.f32.mrb[5].mxu1 }
 0x365   :  { %v1131_v32 = vmul.f32 %v1130_v35, %v3314_v20  ;;  %v1132_v38 = vmul.f32 %v1130_v35, %v3318_v22  ;;  %v1133_v40 = vmul.f32 %v3312_v19, %v1130_v35  ;;  %v1134_v41 = vmul.f32 %v3316_v21, %v1130_v35 }
 0x366   :  { %v1204_v43 = vpop.f32.mrb[6].mxu1 }
 0x367   :  { %v1211_v44 = vrot.slane %v1204_v43, %v3395_v33  ;;  %v2539_v45 = vpop.f32.mrb[7].mxu1 }
 0x369   :  { %v1212_v46 = vadd.f32 %v1211_v44, %v1131_v32  ;;  %v1213_v48 = vadd.f32 %v1211_v44, %v1132_v38  ;;  %v1214_v2 = vadd.f32 %v1211_v44, %v1133_v40  ;;  %v1215_v51 = vadd.f32 %v1211_v44, %v1134_v41 }
 0x36b   :  { %v1216_v37 = vmax.f32 %v1212_v46, 0.0  ;;  %v1217_v39 = vmax.f32 %v1213_v48, 0.0  ;;  %v1218_v55 = vmax.f32 %v1214_v2, 0.0  ;;  %v1219_v56 = vmax.f32 %v1215_v51, 0.0 }
 0x36d   :  { %v2260_v58 = vpack.c.bf16 %v1216_v37, %v1216_v37  ;;  %v2261_v20 = vpack.c.bf16 %v1217_v39, %v1217_v39  ;;  %v2262_v60 = vpack.c.bf16 %v1218_v55, %v1218_v55  ;;  %v2263_v22 = vpack.c.bf16 %v1219_v56, %v1219_v56 }
 0x36f   :  { %v1233_v61 = vshrl.u32 %v2260_v58, 16  ;;  %v1241_v19 = vshrl.u32 %v2261_v20, 16  ;;  %v1250_v62 = vshrl.u32 %v2262_v60, 16  ;;  %v1258_v21 = vshrl.u32 %v2263_v22, 16 }
 0x370   :  { %v1236_v6 = vshll.u32 %v2260_v58, 16  ;;  %v1244_v5 = vshll.u32 %v2261_v20, 16  ;;  %v1253_v9 = vshll.u32 %v2262_v60, 16  ;;  %v1261_v11 = vshll.u32 %v2263_v22, 16 }
 0x371   :  { %v1235_v0 = vrot.slane %v1233_v61, 7  ;;  %v1243_v3 = vrot.slane %v1241_v19, 7  ;;  %v1252_v7 = vrot.slane %v1250_v62, 7  ;;  %v1260_v10 = vrot.slane %v1258_v21, 7 }
 0x373   :  { %v1238_v15 = vor.u32 %v1236_v6, %v1235_v0  ;;  %v1239_v16 = vrot.slane %v1235_v0, 4  ;;  %v1246_v26 = vor.u32 %v1244_v5, %v1243_v3  ;;  %v1248_v28 = vrot.slane %v1243_v3, 4 }
 0x374   :  { %v1255_v30 = vor.u32 %v1253_v9, %v1252_v7  ;;  %v1256_v31 = vrot.slane %v1252_v7, 4  ;;  %v1263_v34 = vor.u32 %v1261_v11, %v1260_v10  ;;  %v1265_v35 = vrot.slane %v1260_v10, 4 }
 0x375   :  { %v1247_v36 = vsel %vm3121_vm15, %v1239_v16, %v1246_v26  ;;  %v1272_v32 = vsel %vm3127_vm0, %v1238_v15, %v3159_v23  ;;  %v1276_v38 = vsel %vm3050_vm4, %v1248_v28, %v1275_v12 }
 0x376   :  { %v1264_v40 = vsel %vm3121_vm15, %v1256_v31, %v1263_v34  ;;  %1273 = vst [vmem:[#allocation2] sm:$0xf] %v1272_v32  ;;  %1274 = vst [vmem:[#allocation2 + $0x4] sm:$0xf] %v1247_v36  ;;  %v1279_v41 = vsel %vm3127_vm0, %v1255_v30, %v1278_v24  ;;  %v1283_v43 = vsel %vm3050_vm4, %v1265_v35, %v1282_v29 }
 0x377   :  { %1277 = vst [vmem:[#allocation2 + $0x8] sm:$0x1] %v1276_v38  ;;  %1280 = vst [vmem:[#allocation2 + $0xc] sm:$0xf] %v1279_v41 }
 0x378   :  { %1281 = vst [vmem:[#allocation2 + $0x10] sm:$0xf] %v1264_v40  ;;  %1284 = vst [vmem:[#allocation2 + $0x14] sm:$0x1] %v1283_v43 }
 0x37d   :  { %v1285_v44 = vld [vmem:[#allocation2] sm:$0xf]  ;;  %v3416_v23 = vld [vmem:[#allocation2 + $0x4] sm:$0xf] }
 0x37e   :  { %v3418_v45 = vld [vmem:[#allocation2 + $0x8] sm:$0x1]  ;;  %v1308_v46 = vshrl.u32 %v1285_v44, 16  ;;  %v1311_v52 = vshll.u32 %v1285_v44, 16  ;;  %v1317_v48 = vshll.u32 %v3416_v23, 16  ;;  %v1321_v2 = vshrl.u32 %v3416_v23, 16 }
 0x37f   :  { %v3422_v51 = vld [vmem:[#allocation2 + $0xc] sm:$0xf]  ;;  %v1327_v59 = vshll.u32 %v3418_v45, 16  ;;  %v3425_v13 = vld [vmem:[#allocation2 + $0x10] sm:$0xf] }
 0x380   :  { %v1332_v37 = vshrl.u32 %v3422_v51, 16  ;;  %v1310_v39 = vrot.slane %v1308_v46, 4  ;;  %v1313_v55 = vrot.slane %v1311_v52, 5  ;;  %v1319_v56 = vrot.slane %v1317_v48, 5  ;;  %v1306_v20 = vld [vmem:[#allocation2 + $0x14] sm:$0x1] }
 0x381   :  { %v1323_v58 = vrot.slane %v1321_v2, 4  ;;  %v1335_v22 = vshll.u32 %v3422_v51, 16  ;;  %v1341_v61 = vshll.u32 %v3425_v13, 16  ;;  %v1345_v21 = vshrl.u32 %v3425_v13, 16  ;;  %v1587_v0 = vld [vmem:[#allocation2 + $0xc] sm:$0xe] }
 0x382   :  { %v1334_v60 = vrot.slane %v1332_v37, 4  ;;  %v1314_v19 = vor.u32 %v1313_v55, %v1310_v39  ;;  %v1329_v6 = vrot.slane %v1327_v59, 5  ;;  %v1351_v11 = vshll.u32 %v1306_v20, 16  ;;  %v2841_v46 = vld [vmem:[#allocation8 + $0x8] sm:$0xff]   ;;  %v2843_v2 = vld [vmem:[#allocation8 + $0x18] sm:$0xff]   ;;  %v2844_v59 = vld [vmem:[#allocation8 + $0x20] sm:$0xff]  }
 0x383   :  { %v1324_v62 = vor.u32 %v1323_v58, %v1319_v56  ;;  %v1337_v3 = vrot.slane %v1335_v22, 5  ;;  %v1343_v5 = vrot.slane %v1341_v61, 5  ;;  %v1347_v10 = vrot.slane %v1345_v21, 4  ;;  %v2845_v37 = vld [vmem:[#allocation8 + $0x28] sm:$0xff]   ;;  %v2846_v39 = vld [vmem:[#allocation8 + $0x30] sm:$0xff]   ;;  %v2849_v58 = vld [vmem:[#allocation8 + $0x80] sm:$0xff]  }
 0x384   :  { %v1315_v7 = vrot.slane %v1314_v19, 4  ;;  %v2209_v15 = vrot.slane %v1587_v0, 9  ;;  %v1601_v24 = vrot.slane %v3425_v13, 5  ;;  %v1353_v34 = vrot.slane %v1351_v11, 5  ;;  %v1586_v55 = vld [vmem:[#allocation2] sm:$0xe] }
 0x385   :  { %v1325_v9 = vrot.slane %v1324_v62, 4  ;;  %v1338_v12 = vor.u32 %v1337_v3, %v1334_v60  ;;  %v1348_v28 = vor.u32 %v1347_v10, %v1343_v5  ;;  %v1604_v36 = vrot.slane %v1306_v20, 5  ;;  %v2850_v19 = vld [vmem:[#allocation8 + $0x88] sm:$0xff]   ;;  %v2851_v21 = vld [vmem:[#allocation8 + $0x90] sm:$0xff]   ;;  %v2853_v0 = vld [vmem:[#allocation8 + $0xa0] sm:$0xff]  }
 0x386   :  { %v1320_v16 = vsel %vm3183_vm5, %v1315_v7, %v1319_v56  ;;  %v1603_v35 = vrot.slane %v1601_v24, 4  ;;  %v3442_v40 = vsel %vm3199_vm8, %v2209_v15, %v1601_v24  ;;  %v2198_v48 = vcombine.low %v1285_v44, %v3416_v23 }
 0x387   :  { %v1330_v26 = vsel %vm3183_vm5, %v1325_v9, %v1329_v6  ;;  %v1339_v30 = vrot.slane %v1338_v12, 4  ;;  %v1349_v31 = vrot.slane %v1348_v28, 4  ;;  %v1594_v44 = vrot.slane %v3416_v23, 5 }
 0x388   :  { %v2188_v29 = vcombine.low %v1320_v16, %v1330_v26  ;;  %v3446_v41 = vsel %vm3199_vm8, %v1603_v35, %v1604_v36  ;;  %v2208_v20 = vrot.slane %v1586_v55, 9  ;;  %v1597_v60 = vrot.slane %v3418_v45, 5  ;;  %v2852_v45 = vld [vmem:[#allocation8 + $0x98] sm:$0xff]  }
 0x389   :  { %v1344_v32 = vsel %vm3183_vm5, %v1339_v30, %v1343_v5  ;;  %v1354_v38 = vsel %vm3183_vm5, %v1349_v31, %v1353_v34  ;;  %v2211_v52 = vcombine.low %v3442_v40, %v3446_v41  ;;  %v1596_v56 = vrot.slane %v1594_v44, 4 }
 0x38a   :  { %2556 = vmatprep.mubr.bf16.mxu1 %v2188_v29  ;;  %v2189_v43 = vcombine.low %v1344_v32, %v1354_v38  ;;  %v2199_v61 = vcombine.low %v3422_v51, %v3425_v13  ;;  %v1595_v23 = vsel %vm3199_vm8, %v2208_v20, %v1594_v44  ;;  %v2854_v51 = vld [vmem:[#allocation8 + $0xa8] sm:$0xff]   ;;  %v2856_v13 = vld [vmem:[#allocation8 + $0xb8] sm:$0xff]  }
 0x38b   :  { %v1598_v22 = vsel %vm3199_vm8, %v1596_v56, %v1597_v60 }
 0x38c   :  { %2557 = vmatmul.mubr.bf16.vlgmr.msra.gmra.mrb[8].mxu1 %v2189_v43  ;;  %v2210_v62 = vcombine.low %v1595_v23, %v1598_v22  ;;  %v2066_v22 = vld [vmem:[#allocation3 + $0x8] sm:$0xff]  ;;  %v2068_v23 = vld [vmem:[#allocation3 + $0x18] sm:$0xff] }
 0x38d   :  { %2561 = vmatpush3.bf16.msra.mxu1 %v3391_v25  ;;  %2576 = vmatprep.mubr.bf16.mxu1 %v2198_v48  ;;  %v2847_v25 = vld [vmem:[#allocation8 + $0x38] sm:$0xff]  }
 0x38e   :  { %2562 = vmatprep.subr.bf16.mxu1 %v2841_v46 }
 0x391   :  { %2563 = vmatpush3.bf16.msra.mxu1 %v2841_v46 }
 0x392   :  { %2564 = vmatprep.subr.bf16.mxu1 %v2842_v50 }
 0x395   :  { %2565 = vmatpush3.bf16.msra.mxu1 %v2842_v50 }
 0x396   :  { %2566 = vmatprep.subr.bf16.mxu1 %v2843_v2 }
 0x399   :  { %2567 = vmatpush3.bf16.msra.mxu1 %v2843_v2  ;;  %v428_v2 = vld [vmem:[%s3557_s3 + $0x3] sm:$0x1] }
 0x39a   :  { %2568 = vmatprep.subr.bf16.mxu1 %v2844_v59 }
 0x39d   :  { %2569 = vmatpush3.bf16.msra.mxu1 %v2844_v59 }
 0x39e   :  { %2570 = vmatprep.subr.bf16.mxu1 %v2845_v37 }
 0x3a1   :  { %2571 = vmatpush3.bf16.msra.mxu1 %v2845_v37 }
 0x3a2   :  { %2572 = vmatprep.subr.bf16.mxu1 %v2846_v39 }
 0x3a5   :  { %2573 = vmatpush3.bf16.msra.mxu1 %v2846_v39 }
 0x3a6   :  { %2574 = vmatprep.subr.bf16.mxu1 %v2847_v25 }
 0x3a9   :  { %2575 = vmatpush3.bf16.msra.mxu1 %v2847_v25 }
 0x3aa   :  { %2580 = vmatprep.subr.bf16.mxu1 %v2849_v58 }
 0x3ac   :  { %2577 = vmatmul.mubr.bf16.vlgmr.msra.gmra.mrb[8].mxu1 %v2199_v61  ;;  %v2067_v61 = vld [vmem:[#allocation3 + $0x10] sm:$0xff] }
 0x3ad   :  { %2581 = vmatpush3.bf16.msra.mxu1 %v2849_v58  ;;  %2596 = vmatprep.mubr.bf16.mxu1 %v2210_v62 }
 0x3ae   :  { %2582 = vmatprep.subr.bf16.mxu1 %v2850_v19 }
 0x3b1   :  { %2583 = vmatpush3.bf16.msra.mxu1 %v2850_v19 }
 0x3b2   :  { %2584 = vmatprep.subr.bf16.mxu1 %v2851_v21 }
 0x3b5   :  { %2585 = vmatpush3.bf16.msra.mxu1 %v2851_v21 }
 0x3b6   :  { %2586 = vmatprep.subr.bf16.mxu1 %v2852_v45 }
 0x3b9   :  { %2587 = vmatpush3.bf16.msra.mxu1 %v2852_v45 }
 0x3ba   :  { %2588 = vmatprep.subr.bf16.mxu1 %v2853_v0 }
 0x3bd   :  { %2589 = vmatpush3.bf16.msra.mxu1 %v2853_v0 }
 0x3be   :  { %2590 = vmatprep.subr.bf16.mxu1 %v2854_v51 }
 0x3c1   :  { %2591 = vmatpush3.bf16.msra.mxu1 %v2854_v51 }
 0x3c2   :  { %2592 = vmatprep.subr.bf16.mxu1 %v2855_v27 }
 0x3c5   :  { %2593 = vmatpush3.bf16.msra.mxu1 %v2855_v27 }
 0x3c6   :  { %2594 = vmatprep.subr.bf16.mxu1 %v2856_v13 }
 0x3c9   :  { %2595 = vmatpush3.bf16.msra.mxu1 %v2856_v13 }
 0x3cc   :  { %2597 = vmatmul.mubr.bf16.vlgmr.msra.gmra.mrb[8].mxu1 %v2211_v52  ;;  %v427_v52 = vld [vmem:[%s3557_s3 + $0x2] sm:$0x1]  ;;  %s2967_s3 = smov [#allocation9]  }
 0x3cd   :  { %s2082_s8 = sshll.u32 %s2967_s3, 4  ;;  %s2083_s8 = int_to_ptr.vmem [resolvable:$true] %s2082_s8 }
 0x3ce   :  { %s2927_s9 = scalar_lea.vmem %s2083_s8, 512  ;;  %p2932_p11 = scmp.lt.s32.totalorder %s2083_s8, %s2083_s8 }
 0x3cf   :  { %p2928_p10 = scmp.ne.s32.totalorder %s2083_s8, %s2927_s9  ;;  %p2933_p12 = scmp.lt.s32.totalorder %s2927_s9, %s2927_s9 }
 0x3d1   :  { %p2934_p13 = por %p2933_p12, %p2932_p11 }
 0x3d3   :  { %p2935_p0 = pnand %p2934_p13, %p2928_p10 }
 0x49f   :  { %v3460_v6 = vpop.f32.mrb[8].mxu1 }
 0x4a0   :  { %v3462_v3 = vpop.f32.mrb[9].mxu1  ;;  %v1743_v12 = vmul.f32 %v3460_v6, %v3460_v6 }
 0x4a1   :  { %v3464_v5 = vpop.f32.mrb[10].mxu1  ;;  %v1741_v9 = vmul.f32 %v3462_v3, %v3462_v3 }
 0x4a2   :  { %v3466_v7 = vpop.f32.mrb[11].mxu1  ;;  %v1744_v26 = vmul.f32 %v3464_v5, %v3464_v5 }
 0x4a3   :  { %v1732_v10 = vadd.f32 %v3466_v7, %v3462_v3  ;;  %v1742_v11 = vmul.f32 %v3466_v7, %v3466_v7 }
 0x4a5   :  { %v1733_v15 = vadd.f32 %v3460_v6, %v1732_v10  ;;  %v1745_v16 = vadd.f32 %v1742_v11, %v1741_v9 }
 0x4a7   :  { %v1734_v28 = vadd.f32 %v3464_v5, %v1733_v15  ;;  %v1746_v24 = vadd.f32 %v1745_v16, %v1743_v12 }
 0x4a9   :  { %v1735_v29 = vrot.slane %v1734_v28, 4  ;;  %v1747_v30 = vadd.f32 %v1746_v24, %v1744_v26 }
 0x4ab   :  { %v1736_v31 = vadd.f32 %v1735_v29, %v1734_v28  ;;  %v1748_v38 = vrot.slane %v1747_v30, 4 }
 0x4ad   :  { %v1737_v34 = vrot.slane %v1736_v31, 2  ;;  %v1749_v42 = vadd.f32 %v1748_v38, %v1747_v30 }
 0x4af   :  { %v1738_v35 = vadd.f32 %v1737_v34, %v1736_v31  ;;  %v1750_v49 = vrot.slane %v1749_v42, 2 }
 0x4b1   :  { %v1739_v36 = vrot.slane %v1738_v35, 1  ;;  %v1751_v4 = vadd.f32 %v1750_v49, %v1749_v42 }
 0x4b3   :  { %v1740_v32 = vadd.f32 %v1739_v36, %v1738_v35  ;;  %v1752_v57 = vrot.slane %v1751_v4, 1 }
 0x4b5   :  { %2633 = vmatmul.mubr.f32.vlgmr.msra.gmra.mrb[4].mxu0 %v1740_v32  ;;  %v1753_v63 = vadd.f32 %v1752_v57, %v1751_v4 }
 0x4b6   :  { %2754 = vmatpush3.bf16.msk.msra.mxu0 %vm3093_vm11, %v2963_v47  ;;  %2667 = vmatprep.mubr.msk.f32.mxu0 %vm2964_vm6, %v2965_v17 }
 0x4b7   :  { %2755 = vmatprep.subr.bf16.mxu0 %v2962_v1 }
 0x4ba   :  { %2757 = vmatpush3.bf16.msk.msra.mxu0 %vm3105_vm12, %v2963_v47 }
 0x4bb   :  { %2758 = vmatprep.subr.bf16.mxu0 %v2962_v1 }
 0x4be   :  { %2760 = vmatpush3.bf16.msk.msra.mxu0 %vm3138_vm1, %v2963_v47 }
 0x4bf   :  { %2761 = vmatprep.subr.bf16.mxu0 %v2962_v1 }
 0x4c2   :  { %2763 = vmatpush3.bf16.msk.msra.mxu0 %vm3234_vm13, %v2963_v47 }
 0x4c3   :  { %2764 = vmatprep.subr.bf16.mxu0 %v2962_v1 }
 0x4c6   :  { %2766 = vmatpush3.bf16.msk.msra.mxu0 %vm3250_vm3, %v2963_v47 }
 0x4c7   :  { %2767 = vmatprep.subr.bf16.mxu0 %v2962_v1 }
 0x4ca   :  { %2769 = vmatpush3.bf16.msk.msra.mxu0 %vm3266_vm9, %v2963_v47 }
 0x4cb   :  { %2770 = vmatprep.subr.bf16.mxu0 %v2962_v1 }
 0x4ce   :  { %2772 = vmatpush3.bf16.msk.msra.mxu0 %vm3282_vm2, %v2963_v47 }
 0x4cf   :  { %2773 = vmatprep.subr.bf16.mxu0 %v2962_v1 }
 0x4d2   :  { %2775 = vmatpush3.bf16.msk.msra.mxu0 %vm3300_vm14, %v2963_v47 }
 0x4d3   :  { %2670 = vmatprep.subr.mxu0 %v2965_v17 }
 0x4d5   :  { %2668 = vmatmul.mubr.f32.vlgmr.msra.gmra.mrb[6].mxu0 %v1753_v63 }
 0x4d6   :  { %2671 = vmatpush3.msk.msra.mxu0 %vm3370_vm7, %v2966_v54  ;;  %2672 = vmatprep.mubr.msk.f32.mxu0 %vm2964_vm6, %v2965_v17 }
 0x4d7   :  { %2675 = vmatprep.subr.mxu0 %v2965_v17 }
 0x588   :  { %v1820_v8 = vpop.f32.mrb[4].mxu0 }
 0x589   :  { %v2634_v1 = vpop.f32.mrb[5].mxu0  ;;  %v1824_v14 = vmul.f32 0.001953125, %v1820_v8 }
 0x58b   :  { %v1896_v41 = vmul.f32 %v1824_v14, %v1824_v14 }
 0x5a8   :  { %v1891_v40 = vpop.f32.mrb[6].mxu0 }
 0x5a9   :  { %v1895_v18 = vmul.f32 0.001953125, %v1891_v40  ;;  %v2669_v47 = vpop.f32.mrb[7].mxu0 }
 0x5ab   :  { %v1897_v43 = vsub.f32 %v1895_v18, %v1896_v41 }
 0x5ad   :  { %v1898_v46 = vadd.f32 1e-05, %v1897_v43 }
 0x5af   :  { %2859 = vrsqrt.f32 %v1898_v46 }
 0x5b9   :  { %v2860_v48 = vpop.eup %2859 }
 0x5ba   :  { %v1900_v50 = vmul.f32 %v2860_v48, %v427_v52 }
 0x5bc   :  { %2673 = vmatmul.mubr.msk.f32.vlgmr.msra.gmra.mrb[8].mxu0 %vm1053_vm10, %v1900_v50  ;;  %v1901_v59 = vmul.f32 %v1900_v50, %v1824_v14 }
 0x5bd   :  { %2676 = vmatpush3.msk.msra.mxu0 %vm3370_vm7, %v2966_v54  ;;  %2677 = vmatprep.mubr.msk.f32.mxu0 %vm2964_vm6, %v2965_v17  ;;  %v2065_v17 = vld [vmem:[#allocation3] sm:$0xff] }
 0x5be   :  { %v1902_v37 = vsub.f32 %v428_v2, %v1901_v59 }
 0x5c0   :  { %2678 = vmatmul.mubr.msk.f32.vlgmr.msra.gmra.mrb[10].mxu0 %vm1053_vm10, %v1902_v37 }
 0x68f   :  { %v1972_v39 = vpop.f32.mrb[8].mxu0 }
 0x690   :  { %v1979_v44 = vrot.slane %v1972_v39, %v3395_v33  ;;  %v2674_v25 = vpop.f32.mrb[9].mxu0 }
 0x692   :  { %v1980_v55 = vmul.f32 %v1979_v44, %v3462_v3  ;;  %v1981_v56 = vmul.f32 %v1979_v44, %v3466_v7  ;;  %v1982_v58 = vmul.f32 %v3460_v6, %v1979_v44  ;;  %v1983_v20 = vmul.f32 %v3464_v5, %v1979_v44 }
 0x693   :  { %v2053_v53 = vpop.f32.mrb[10].mxu0 }
 0x694   :  { %v2060_v54 = vrot.slane %v2053_v53, %v3395_v33  ;;  %v2679_v60 = vpop.f32.mrb[11].mxu0 }
 0x696   :  { %v2061_v19 = vadd.f32 %v2060_v54, %v1980_v55  ;;  %v2062_v62 = vadd.f32 %v2060_v54, %v1981_v56  ;;  %v2063_v21 = vadd.f32 %v2060_v54, %v1982_v58  ;;  %v2064_v45 = vadd.f32 %v2060_v54, %v1983_v20 }
 0x698   :  { %v2069_v0 = vadd.f32 %v2065_v17, %v2061_v19  ;;  %v2070_v51 = vadd.f32 %v2066_v22, %v2062_v62  ;;  %v2071_v27 = vadd.f32 %v2067_v61, %v2063_v21  ;;  %v2072_v13 = vadd.f32 %v2068_v23, %v2064_v45 }
 0x69a   :  { %2073 = vst [vmem:[#allocation9] sm:$0xff] %v2069_v0  ;;  %2074 = vst [vmem:[#allocation9 + $0x8] sm:$0xff] %v2070_v51 }
 0x69b   :  { %2075 = vst [vmem:[#allocation9 + $0x10] sm:$0xff] %v2071_v27  ;;  %2076 = vst [vmem:[#allocation9 + $0x18] sm:$0xff] %v2072_v13 }
 0x69c   :  { %2938 = shalt.err (!%p2935_p0)
}
 0x69d   :  { %s2939_s12 = scalar_lea.hbm %s3558_s4, 512 }
 0x69e   :  { %p2940_p1 = scmp.ne.s32.totalorder %s3558_s4, %s2939_s12  ;;  %p2943_p2 = scmp.lt.u32.totalorder %s2939_s12, %s3558_s4 }
 0x6a0   :  { %p2945_p3 = pnand %p2943_p2, %p2940_p1 }
 0x6a2   :  { %2948 = shalt.err (!%p2945_p3)
}
 0x6a3   :  { %2088 = dma.vmem_to_hbm [thread:$0]  %s2083_s8, 512, %s3558_s4, [#allocation5], %s2959_s1, %s2959_s1, %s2960_s13  }
 0x6a4   :  { %2953 = dma.done.wait [#allocation5], 512  }
 0x6a5   :  { %2954 = vsyncadd [#allocation5], 4294966784 }
 0x6a6   :  { %2092 = vsyncpa [#allocation4], 1 }
 0x6a7   :  { %2093 = vsyncpa [#allocation7], 1 }
 0x6a8   :  { %2094 = vsyncpa [#allocation5], 1 }

</bundles_post_ra>
